<compile_context>
chip_gen: v6e
topology: v6e:2x2x1
jax: 0.10.0
libtpu: 0.0.40
codegen_flags: <defaults>
</compile_context>

<pallas_src>
import numpy as np
import jax
import jax.numpy as jnp
from jax import lax
from jax.experimental import pallas as pl
from jax.experimental.pallas import tpu as pltpu

_SQRT_HALF = 0.7071067811865476


def _gelu(v):
    # exact (erf) GELU, matching torch.nn.GELU() default
    return 0.5 * v * (1.0 + lax.erf(v * _SQRT_HALF))


def _layernorm_ch(v, gamma, beta, eps):
    # layer norm over the channel (first / sublane) axis, per spatial position
    mu = jnp.mean(v, axis=0, keepdims=True)
    var = jnp.mean(jnp.square(v - mu), axis=0, keepdims=True)
    return (v - mu) * lax.rsqrt(var + eps) * gamma + beta


def _build_tap_tables(H, W, k, p, nb):
    """Static per-tap lane shifts and 0/1 validity masks for a lane axis that
    holds `nb` whole images back-to-back (length Lb = nb*H*W)."""
    HW = H * W
    Lb = nb * HW
    ho, wo = np.divmod(np.arange(HW), W)
    shifts, masks = [], []
    for ki in range(k):
        for kj in range(k):
            dy, dx = ki - p, kj - p
            # rolled[g] = h[(g + dy*W + dx) mod Lb]; the mask zeroes every lane
            # whose source lies outside its own image (incl. cross-image pulls
            # and block wrap-around), so tiling images on lanes is safe.
            shifts.append(int((-(dy * W + dx)) % Lb))
            valid = ((ho + dy >= 0) & (ho + dy < H) &
                     (wo + dx >= 0) & (wo + dx < W))
            masks.append(np.tile(valid.astype(np.float32), nb))
    mask = np.stack(masks, 0).reshape(k * k, 1, Lb)
    return shifts, mask


def _choose_images_per_step(N, Cin, Cout, HW, nt, vmem_budget=8 * 1024 * 1024):
    """Largest divisor of N that keeps >=2 grid steps (v7x has 2 TensorCores)
    and a conservative per-step VMEM footprint."""
    best = 1
    for nb in range(1, N + 1):
        if N % nb:
            continue
        if N >= 2 and N // nb < 2:
            continue
        Lb = nb * HW
        per_step = (
            2 * Cin * Lb * 4                 # input block (double-buffered)
            + 2 * Cout * Lb * 4              # output block (double-buffered)
            + nt * (Cin + Cout) * Lb * 2     # bf16 im2col scratches
            + nt * Lb * 2                    # tap masks
            + 4 * Cout * Lb * 4              # live f32 activations (rough)
        )
        if per_step <= vmem_budget:
            best = nb
    return best


def _make_kernel(Cin, Cout, nt, eps, use_res_conv, shifts, stack_dtype):

    def _conv(h32, mask_ref, stack_ref, w_ref, b_ref, C):
        # Single store pass: k*k rolled + masked slabs -> (k*k*C, Lb) stack.
        for t, s in enumerate(shifts):
            rolled = h32 if s == 0 else pltpu.roll(h32, s, axis=1)
            # TODO(synk): roll directly in bf16 once 16-bit lane rotate support
            # is confirmed; cast+mask already run in the (bf16) stack dtype.
            stack_ref[pl.ds(t * C, C), :] = rolled.astype(stack_dtype) * mask_ref[t]
        stk = stack_ref[...]
        if stack_dtype != jnp.bfloat16:
            stk = stk.astype(jnp.bfloat16)
        # One (Cout, k*k*C) @ (k*k*C, Lb) MXU matmul with f32 accumulation.
        return jnp.dot(w_ref[...], stk,
                       preferred_element_type=jnp.float32) + b_ref[...]

    def kernel(*refs):
        if use_res_conv:
            (x_ref, mask_ref, rw_ref, rb_ref,
             g1_ref, bt1_ref, w1_ref, b1_ref,
             g2_ref, bt2_ref, w2_ref, b2_ref,
             out_ref, stk1_ref, stk2_ref) = refs
        else:
            (x_ref, mask_ref,
             g1_ref, bt1_ref, w1_ref, b1_ref,
             g2_ref, bt2_ref, w2_ref, b2_ref,
             out_ref, stk1_ref, stk2_ref) = refs

        x = x_ref[...].astype(jnp.float32)                     # (Cin, Lb)

        # norm1 -> gelu -> conv1
        h = _gelu(_layernorm_ch(x, g1_ref[...], bt1_ref[...], eps))
        y = _conv(h, mask_ref, stk1_ref, w1_ref, b1_ref, Cin)  # (Cout, Lb) f32

        # norm2 -> gelu -> conv2
        h = _gelu(_layernorm_ch(y, g2_ref[...], bt2_ref[...], eps))
        y = _conv(h, mask_ref, stk2_ref, w2_ref, b2_ref, Cout)  # (Cout, Lb) f32

        # residual computed last so its (Cout/Cin, Lb) slab has a short live range
        if use_res_conv:                                        # 1x1 conv on MXU
            r = jnp.dot(rw_ref[...], x_ref[...].astype(jnp.bfloat16),
                        preferred_element_type=jnp.float32) + rb_ref[...]
        else:                                                   # identity: re-read
            r = x_ref[...].astype(jnp.float32)

        out_ref[...] = (y + r).astype(out_ref.dtype)            # lane-dense store

    return kernel


def preact_res_conv_block(x_nchw, params, *, kernel_size, stride, padding, eps=1e-5):
    assert stride == 1, "kernel implemented for stride=1 (residual add requires it)"
    k, p = kernel_size, padding
    N, Cin, H, W = x_nchw.shape
    Cout = params["conv1_w"].shape[0]
    assert H - k + 2 * p + 1 == H and W - k + 2 * p + 1 == W, \
        "residual add requires shape-preserving convs"
    HW = H * W
    nt = k * k
    use_res_conv = (Cin != Cout)

    nb = _choose_images_per_step(N, Cin, Cout, HW, nt)
    steps = N // nb
    Lb = nb * HW

    # bf16 im2col stack when the per-tap sublane block heights align with the
    # bf16 sublane packing (even C); otherwise fall back to an f32 stack.
    stack_dtype = jnp.bfloat16 if (Cin % 2 == 0 and Cout % 2 == 0) else jnp.float32

    # Channel-major, lane-dense layout (C, N*HW): one-time wrapper transpose.
    x_cm = jnp.transpose(x_nchw.reshape(N, Cin, HW), (1, 0, 2)).reshape(Cin, N * HW)

    shifts, mask_np = _build_tap_tables(H, W, k, p, nb)
    mask = jnp.asarray(mask_np, stack_dtype)                    # (k*k, 1, Lb)

    # Conv weights pre-folded to (Cout, k*k*Cin_) bf16; the im2col stack rows
    # are ordered tap-major / channel-minor to match.
    w1 = jnp.transpose(params["conv1_w"], (0, 2, 3, 1)).reshape(
        Cout, nt * Cin).astype(jnp.bfloat16)
    w2 = jnp.transpose(params["conv2_w"], (0, 2, 3, 1)).reshape(
        Cout, nt * Cout).astype(jnp.bfloat16)
    b1 = params["conv1_b"].reshape(Cout, 1).astype(jnp.float32)
    b2 = params["conv2_b"].reshape(Cout, 1).astype(jnp.float32)
    g1 = params["norm1_g"].reshape(Cin, 1).astype(jnp.float32)
    bt1 = params["norm1_b"].reshape(Cin, 1).astype(jnp.float32)
    g2 = params["norm2_g"].reshape(Cout, 1).astype(jnp.float32)
    bt2 = params["norm2_b"].reshape(Cout, 1).astype(jnp.float32)

    args = [x_cm, mask]
    in_specs = [pl.BlockSpec((Cin, Lb), lambda i: (0, i))]

    def full_spec(a):
        nd = a.ndim
        return pl.BlockSpec(a.shape, lambda i, _nd=nd: (0,) * _nd)

    in_specs.append(full_spec(mask))

    if use_res_conv:
        rw = params["res_w"][:, :, 0, 0].astype(jnp.bfloat16)   # (Cout, Cin)
        rb = params["res_b"].reshape(Cout, 1).astype(jnp.float32)
        extras = [rw, rb]
    else:
        extras = []

    for a in extras + [g1, bt1, w1, b1, g2, bt2, w2, b2]:
        args.append(a)
        in_specs.append(full_spec(a))

    kernel = _make_kernel(Cin, Cout, nt, eps, use_res_conv, shifts, stack_dtype)

    out = pl.pallas_call(
        kernel,
        out_shape=jax.ShapeDtypeStruct((Cout, N * HW), x_nchw.dtype),
        grid=(steps,),
        in_specs=in_specs,
        out_specs=pl.BlockSpec((Cout, Lb), lambda i: (0, i)),
        scratch_shapes=[pltpu.VMEM((nt * Cin, Lb), stack_dtype),
                        pltpu.VMEM((nt * Cout, Lb), stack_dtype)],
        compiler_params=pltpu.CompilerParams(
            dimension_semantics=("parallel",),      # image blocks are independent
            vmem_limit_bytes=32 * 1024 * 1024,
        ),
    )(*args)
    return jnp.transpose(out.reshape(Cout, N, H, W), (1, 0, 2, 3))


# ----------------------- pure-JAX reference (for checking) -----------------------
def reference(x_nchw, params, *, kernel_size, stride, padding, eps=1e-5):
    # Conv/matmul inputs cast to bf16 with f32 accumulation to match the
    # kernel's MXU precision; everything else in f32.
    def conv(h, w_oihw, b, pad):
        y = lax.conv_general_dilated(
            h.astype(jnp.bfloat16), w_oihw.astype(jnp.bfloat16),
            (stride, stride), [(pad, pad)] * 2,
            dimension_numbers=("NCHW", "OIHW", "NCHW"),
            preferred_element_type=jnp.float32)
        return y + b.reshape(1, -1, 1, 1)

    def ln(h, g, bt):
        mu = jnp.mean(h, 1, keepdims=True)
        var = jnp.mean((h - mu) ** 2, 1, keepdims=True)
        return ((h - mu) / jnp.sqrt(var + eps) * g.reshape(1, -1, 1, 1)
                + bt.reshape(1, -1, 1, 1))

    Cin = x_nchw.shape[1]
    Cout = params["conv1_w"].shape[0]
    if Cin != Cout:
        r = conv(x_nchw, params["res_w"], params["res_b"], 0)
    else:
        r = x_nchw
    h = _gelu(ln(x_nchw, params["norm1_g"], params["norm1_b"]))
    h = conv(h, params["conv1_w"], params["conv1_b"], padding)
    h = _gelu(ln(h, params["norm2_g"], params["norm2_b"]))
    h = conv(h, params["conv2_w"], params["conv2_b"], padding)
    return (h + r).astype(x_nchw.dtype)


if __name__ == "__main__":
    def make_params(keys, in_c, out_c, k):
        prm = {
            "norm1_g": 1.0 + 0.1 * jax.random.normal(keys[3], (in_c,), jnp.float32),
            "norm1_b": 0.1 * jax.random.normal(keys[4], (in_c,), jnp.float32),
            "conv1_w": 0.2 * jax.random.normal(keys[5], (out_c, in_c, k, k), jnp.float32),
            "conv1_b": 0.1 * jax.random.normal(keys[6], (out_c,), jnp.float32),
            "norm2_g": 1.0 + 0.1 * jax.random.normal(keys[7], (out_c,), jnp.float32),
            "norm2_b": 0.1 * jax.random.normal(keys[8], (out_c,), jnp.float32),
            "conv2_w": 0.2 * jax.random.normal(keys[9], (out_c, out_c, k, k), jnp.float32),
            "conv2_b": 0.1 * jax.random.normal(keys[10], (out_c,), jnp.float32),
        }
        if in_c != out_c:
            prm["res_w"] = 0.2 * jax.random.normal(keys[1], (out_c, in_c, 1, 1), jnp.float32)
            prm["res_b"] = 0.1 * jax.random.normal(keys[2], (out_c,), jnp.float32)
        return prm

    in_c, out_c, H, W, k, s, pad = 4, 8, 16, 16, 3, 1, 1

    # case 1: Cin != Cout  (1x1-conv residual)
    keys = jax.random.split(jax.random.PRNGKey(0), 11)
    x = jax.random.normal(keys[0], (2, in_c, H, W), jnp.float32)
    params = make_params(keys, in_c, out_c, k)
    y = jax.block_until_ready(
        preact_res_conv_block(x, params, kernel_size=k, stride=s, padding=pad))
    y_ref = reference(x, params, kernel_size=k, stride=s, padding=pad)
    assert y.shape == (2, out_c, H, W), y.shape
    assert jnp.allclose(y, y_ref, atol=1e-2, rtol=1e-2), \
        float(jnp.max(jnp.abs(y - y_ref)))

    # case 2: Cin == Cout  (identity residual)
    keys2 = jax.random.split(jax.random.PRNGKey(1), 11)
    x2 = jax.random.normal(keys2[0], (2, out_c, H, W), jnp.float32)
    params2 = make_params(keys2, out_c, out_c, k)
    y2 = jax.block_until_ready(
        preact_res_conv_block(x2, params2, kernel_size=k, stride=s, padding=pad))
    y2_ref = reference(x2, params2, kernel_size=k, stride=s, padding=pad)
    assert y2.shape == (2, out_c, H, W), y2.shape
    assert jnp.allclose(y2, y2_ref, atol=1e-2, rtol=1e-2), \
        float(jnp.max(jnp.abs(y2 - y2_ref)))

    print("KERNEL_OK")
</pallas_src>

<mosaic_0001>
module attributes {stable_mosaic.version = 11 : i64} {
  func.func @kernel(%arg0: i32, %arg1: memref<4x256xf32, #tpu.memory_space<vmem>>, %arg2: memref<9x1x256xbf16, #tpu.memory_space<vmem>>, %arg3: memref<8x4xbf16, #tpu.memory_space<vmem>>, %arg4: memref<8x1xf32, #tpu.memory_space<vmem>>, %arg5: memref<4x1xf32, #tpu.memory_space<vmem>>, %arg6: memref<4x1xf32, #tpu.memory_space<vmem>>, %arg7: memref<8x36xbf16, #tpu.memory_space<vmem>>, %arg8: memref<8x1xf32, #tpu.memory_space<vmem>>, %arg9: memref<8x1xf32, #tpu.memory_space<vmem>>, %arg10: memref<8x1xf32, #tpu.memory_space<vmem>>, %arg11: memref<8x72xbf16, #tpu.memory_space<vmem>>, %arg12: memref<8x1xf32, #tpu.memory_space<vmem>>, %arg13: memref<8x256xf32, #tpu.memory_space<vmem>>, %arg14: memref<36x256xbf16, #tpu.memory_space<vmem>>, %arg15: memref<72x256xbf16, #tpu.memory_space<vmem>>) attributes {dimension_semantics = [#tpu.dimension_semantics<parallel>], iteration_bounds = array<i64: 2>, scalar_prefetch = 0 : i64, scratch_operands = 2 : i64, tpu.core_type = #tpu.core_type<tc>, window_params = [{transform_indices = @transform_0, window_bounds = array<i64: 4, 256>}, {pipeline_mode = #tpu.pipeline_mode<synchronous>, transform_indices = @transform_1, window_bounds = array<i64: 9, 1, 256>}, {pipeline_mode = #tpu.pipeline_mode<synchronous>, transform_indices = @transform_2, window_bounds = array<i64: 8, 4>}, {pipeline_mode = #tpu.pipeline_mode<synchronous>, transform_indices = @transform_3, window_bounds = array<i64: 8, 1>}, {pipeline_mode = #tpu.pipeline_mode<synchronous>, transform_indices = @transform_4, window_bounds = array<i64: 4, 1>}, {pipeline_mode = #tpu.pipeline_mode<synchronous>, transform_indices = @transform_5, window_bounds = array<i64: 4, 1>}, {pipeline_mode = #tpu.pipeline_mode<synchronous>, transform_indices = @transform_6, window_bounds = array<i64: 8, 36>}, {pipeline_mode = #tpu.pipeline_mode<synchronous>, transform_indices = @transform_7, window_bounds = array<i64: 8, 1>}, {pipeline_mode = #tpu.pipeline_mode<synchronous>, transform_indices = @transform_8, window_bounds = array<i64: 8, 1>}, {pipeline_mode = #tpu.pipeline_mode<synchronous>, transform_indices = @transform_9, window_bounds = array<i64: 8, 1>}, {pipeline_mode = #tpu.pipeline_mode<synchronous>, transform_indices = @transform_10, window_bounds = array<i64: 8, 72>}, {pipeline_mode = #tpu.pipeline_mode<synchronous>, transform_indices = @transform_11, window_bounds = array<i64: 8, 1>}, {transform_indices = @transform_12, window_bounds = array<i64: 8, 256>}]} {
    %c0 = arith.constant 0 : index
    %c0_0 = arith.constant 0 : index
    %0 = vector.load %arg1[%c0, %c0_0] : memref<4x256xf32, #tpu.memory_space<vmem>>, vector<4x256xf32>
    %c0_1 = arith.constant 0 : index
    %c0_2 = arith.constant 0 : index
    %1 = vector.load %arg5[%c0_1, %c0_2] : memref<4x1xf32, #tpu.memory_space<vmem>>, vector<4x1xf32>
    %c0_3 = arith.constant 0 : index
    %c0_4 = arith.constant 0 : index
    %2 = vector.load %arg6[%c0_3, %c0_4] : memref<4x1xf32, #tpu.memory_space<vmem>>, vector<4x1xf32>
    %cst = arith.constant dense<0.000000e+00> : vector<256xf32>
    %3 = vector.multi_reduction <add>, %0, %cst [0] : vector<4x256xf32> to vector<256xf32>
    %4 = vector.shape_cast %3 : vector<256xf32> to vector<1x256xf32>
    %cst_5 = arith.constant 4.000000e+00 : f32
    %5 = vector.broadcast %cst_5 : f32 to vector<1x256xf32>
    %6 = arith.divf %4, %5 : vector<1x256xf32>
    %7 = vector.broadcast %6 : vector<1x256xf32> to vector<4x256xf32>
    %8 = arith.subf %0, %7 : vector<4x256xf32>
    %9 = arith.mulf %8, %8 : vector<4x256xf32>
    %cst_6 = arith.constant dense<0.000000e+00> : vector<256xf32>
    %10 = vector.multi_reduction <add>, %9, %cst_6 [0] : vector<4x256xf32> to vector<256xf32>
    %11 = vector.shape_cast %10 : vector<256xf32> to vector<1x256xf32>
    %cst_7 = arith.constant 4.000000e+00 : f32
    %12 = vector.broadcast %cst_7 : f32 to vector<1x256xf32>
    %13 = arith.divf %11, %12 : vector<1x256xf32>
    %14 = vector.broadcast %6 : vector<1x256xf32> to vector<4x256xf32>
    %15 = arith.subf %0, %14 : vector<4x256xf32>
    %cst_8 = arith.constant 9.99999974E-6 : f32
    %16 = vector.broadcast %cst_8 : f32 to vector<1x256xf32>
    %17 = arith.addf %13, %16 : vector<1x256xf32>
    %18 = math.rsqrt %17 : vector<1x256xf32>
    %19 = vector.broadcast %18 : vector<1x256xf32> to vector<4x256xf32>
    %20 = arith.mulf %15, %19 : vector<4x256xf32>
    %21 = vector.broadcast %1 : vector<4x1xf32> to vector<4x256xf32>
    %22 = arith.mulf %20, %21 : vector<4x256xf32>
    %23 = vector.broadcast %2 : vector<4x1xf32> to vector<4x256xf32>
    %24 = arith.addf %22, %23 : vector<4x256xf32>
    %cst_9 = arith.constant 5.000000e-01 : f32
    %25 = vector.broadcast %cst_9 : f32 to vector<4x256xf32>
    %26 = arith.mulf %25, %24 : vector<4x256xf32>
    %cst_10 = arith.constant 0.707106769 : f32
    %27 = vector.broadcast %cst_10 : f32 to vector<4x256xf32>
    %28 = arith.mulf %24, %27 : vector<4x256xf32>
    %29 = math.erf %28 : vector<4x256xf32>
    %cst_11 = arith.constant 1.000000e+00 : f32
    %30 = vector.broadcast %cst_11 : f32 to vector<4x256xf32>
    %31 = arith.addf %30, %29 : vector<4x256xf32>
    %32 = arith.mulf %26, %31 : vector<4x256xf32>
    %c17_i32 = arith.constant 17 : i32
    %33 = tpu.dynamic_rotate %32 by %c17_i32 dim 1 : vector<4x256xf32>, i32 -> vector<4x256xf32>
    %34 = arith.truncf %33 : vector<4x256xf32> to vector<4x256xbf16>
    %c0_12 = arith.constant 0 : index
    %c0_13 = arith.constant 0 : index
    %c0_14 = arith.constant 0 : index
    %35 = vector.load %arg2[%c0_12, %c0_13, %c0_14] : memref<9x1x256xbf16, #tpu.memory_space<vmem>>, vector<1x1x256xbf16>
    %36 = vector.shape_cast %35 : vector<1x1x256xbf16> to vector<1x256xbf16>
    %37 = vector.broadcast %36 : vector<1x256xbf16> to vector<4x256xbf16>
    %38 = arith.mulf %34, %37 : vector<4x256xbf16>
    %c0_15 = arith.constant 0 : index
    %c0_16 = arith.constant 0 : index
    %39 = vector.load %arg14[%c0_15, %c0_16] : memref<36x256xbf16, #tpu.memory_space<vmem>>, vector<4x256xbf16>
    tpu.vector_store %arg14[%c0_15, %c0_16], %38 {strides = array<i32>} : memref<36x256xbf16, #tpu.memory_space<vmem>>, vector<4x256xbf16>,
    %c16_i32 = arith.constant 16 : i32
    %40 = tpu.dynamic_rotate %32 by %c16_i32 dim 1 : vector<4x256xf32>, i32 -> vector<4x256xf32>
    %41 = arith.truncf %40 : vector<4x256xf32> to vector<4x256xbf16>
    %c1 = arith.constant 1 : index
    %c0_17 = arith.constant 0 : index
    %c0_18 = arith.constant 0 : index
    %42 = vector.load %arg2[%c1, %c0_17, %c0_18] : memref<9x1x256xbf16, #tpu.memory_space<vmem>>, vector<1x1x256xbf16>
    %43 = vector.shape_cast %42 : vector<1x1x256xbf16> to vector<1x256xbf16>
    %44 = vector.broadcast %43 : vector<1x256xbf16> to vector<4x256xbf16>
    %45 = arith.mulf %41, %44 : vector<4x256xbf16>
    %c4 = arith.constant 4 : index
    %c0_19 = arith.constant 0 : index
    %46 = vector.load %arg14[%c4, %c0_19] : memref<36x256xbf16, #tpu.memory_space<vmem>>, vector<4x256xbf16>
    tpu.vector_store %arg14[%c4, %c0_19], %45 {strides = array<i32>} : memref<36x256xbf16, #tpu.memory_space<vmem>>, vector<4x256xbf16>,
    %c15_i32 = arith.constant 15 : i32
    %47 = tpu.dynamic_rotate %32 by %c15_i32 dim 1 : vector<4x256xf32>, i32 -> vector<4x256xf32>
    %48 = arith.truncf %47 : vector<4x256xf32> to vector<4x256xbf16>
    %c2 = arith.constant 2 : index
    %c0_20 = arith.constant 0 : index
    %c0_21 = arith.constant 0 : index
    %49 = vector.load %arg2[%c2, %c0_20, %c0_21] : memref<9x1x256xbf16, #tpu.memory_space<vmem>>, vector<1x1x256xbf16>
    %50 = vector.shape_cast %49 : vector<1x1x256xbf16> to vector<1x256xbf16>
    %51 = vector.broadcast %50 : vector<1x256xbf16> to vector<4x256xbf16>
    %52 = arith.mulf %48, %51 : vector<4x256xbf16>
    %c8 = arith.constant 8 : index
    %c0_22 = arith.constant 0 : index
    %53 = vector.load %arg14[%c8, %c0_22] : memref<36x256xbf16, #tpu.memory_space<vmem>>, vector<4x256xbf16>
    tpu.vector_store %arg14[%c8, %c0_22], %52 {strides = array<i32>} : memref<36x256xbf16, #tpu.memory_space<vmem>>, vector<4x256xbf16>,
    %c1_i32 = arith.constant 1 : i32
    %54 = tpu.dynamic_rotate %32 by %c1_i32 dim 1 : vector<4x256xf32>, i32 -> vector<4x256xf32>
    %55 = arith.truncf %54 : vector<4x256xf32> to vector<4x256xbf16>
    %c3 = arith.constant 3 : index
    %c0_23 = arith.constant 0 : index
    %c0_24 = arith.constant 0 : index
    %56 = vector.load %arg2[%c3, %c0_23, %c0_24] : memref<9x1x256xbf16, #tpu.memory_space<vmem>>, vector<1x1x256xbf16>
    %57 = vector.shape_cast %56 : vector<1x1x256xbf16> to vector<1x256xbf16>
    %58 = vector.broadcast %57 : vector<1x256xbf16> to vector<4x256xbf16>
    %59 = arith.mulf %55, %58 : vector<4x256xbf16>
    %c12 = arith.constant 12 : index
    %c0_25 = arith.constant 0 : index
    %60 = vector.load %arg14[%c12, %c0_25] : memref<36x256xbf16, #tpu.memory_space<vmem>>, vector<4x256xbf16>
    tpu.vector_store %arg14[%c12, %c0_25], %59 {strides = array<i32>} : memref<36x256xbf16, #tpu.memory_space<vmem>>, vector<4x256xbf16>,
    %61 = arith.truncf %32 : vector<4x256xf32> to vector<4x256xbf16>
    %c4_26 = arith.constant 4 : index
    %c0_27 = arith.constant 0 : index
    %c0_28 = arith.constant 0 : index
    %62 = vector.load %arg2[%c4_26, %c0_27, %c0_28] : memref<9x1x256xbf16, #tpu.memory_space<vmem>>, vector<1x1x256xbf16>
    %63 = vector.shape_cast %62 : vector<1x1x256xbf16> to vector<1x256xbf16>
    %64 = vector.broadcast %63 : vector<1x256xbf16> to vector<4x256xbf16>
    %65 = arith.mulf %61, %64 : vector<4x256xbf16>
    %c16 = arith.constant 16 : index
    %c0_29 = arith.constant 0 : index
    %66 = vector.load %arg14[%c16, %c0_29] : memref<36x256xbf16, #tpu.memory_space<vmem>>, vector<4x256xbf16>
    tpu.vector_store %arg14[%c16, %c0_29], %65 {strides = array<i32>} : memref<36x256xbf16, #tpu.memory_space<vmem>>, vector<4x256xbf16>,
    %c255_i32 = arith.constant 255 : i32
    %67 = tpu.dynamic_rotate %32 by %c255_i32 dim 1 : vector<4x256xf32>, i32 -> vector<4x256xf32>
    %68 = arith.truncf %67 : vector<4x256xf32> to vector<4x256xbf16>
    %c5 = arith.constant 5 : index
    %c0_30 = arith.constant 0 : index
    %c0_31 = arith.constant 0 : index
    %69 = vector.load %arg2[%c5, %c0_30, %c0_31] : memref<9x1x256xbf16, #tpu.memory_space<vmem>>, vector<1x1x256xbf16>
    %70 = vector.shape_cast %69 : vector<1x1x256xbf16> to vector<1x256xbf16>
    %71 = vector.broadcast %70 : vector<1x256xbf16> to vector<4x256xbf16>
    %72 = arith.mulf %68, %71 : vector<4x256xbf16>
    %c20 = arith.constant 20 : index
    %c0_32 = arith.constant 0 : index
    %73 = vector.load %arg14[%c20, %c0_32] : memref<36x256xbf16, #tpu.memory_space<vmem>>, vector<4x256xbf16>
    tpu.vector_store %arg14[%c20, %c0_32], %72 {strides = array<i32>} : memref<36x256xbf16, #tpu.memory_space<vmem>>, vector<4x256xbf16>,
    %c241_i32 = arith.constant 241 : i32
    %74 = tpu.dynamic_rotate %32 by %c241_i32 dim 1 : vector<4x256xf32>, i32 -> vector<4x256xf32>
    %75 = arith.truncf %74 : vector<4x256xf32> to vector<4x256xbf16>
    %c6 = arith.constant 6 : index
    %c0_33 = arith.constant 0 : index
    %c0_34 = arith.constant 0 : index
    %76 = vector.load %arg2[%c6, %c0_33, %c0_34] : memref<9x1x256xbf16, #tpu.memory_space<vmem>>, vector<1x1x256xbf16>
    %77 = vector.shape_cast %76 : vector<1x1x256xbf16> to vector<1x256xbf16>
    %78 = vector.broadcast %77 : vector<1x256xbf16> to vector<4x256xbf16>
    %79 = arith.mulf %75, %78 : vector<4x256xbf16>
    %c24 = arith.constant 24 : index
    %c0_35 = arith.constant 0 : index
    %80 = vector.load %arg14[%c24, %c0_35] : memref<36x256xbf16, #tpu.memory_space<vmem>>, vector<4x256xbf16>
    tpu.vector_store %arg14[%c24, %c0_35], %79 {strides = array<i32>} : memref<36x256xbf16, #tpu.memory_space<vmem>>, vector<4x256xbf16>,
    %c240_i32 = arith.constant 240 : i32
    %81 = tpu.dynamic_rotate %32 by %c240_i32 dim 1 : vector<4x256xf32>, i32 -> vector<4x256xf32>
    %82 = arith.truncf %81 : vector<4x256xf32> to vector<4x256xbf16>
    %c7 = arith.constant 7 : index
    %c0_36 = arith.constant 0 : index
    %c0_37 = arith.constant 0 : index
    %83 = vector.load %arg2[%c7, %c0_36, %c0_37] : memref<9x1x256xbf16, #tpu.memory_space<vmem>>, vector<1x1x256xbf16>
    %84 = vector.shape_cast %83 : vector<1x1x256xbf16> to vector<1x256xbf16>
    %85 = vector.broadcast %84 : vector<1x256xbf16> to vector<4x256xbf16>
    %86 = arith.mulf %82, %85 : vector<4x256xbf16>
    %c28 = arith.constant 28 : index
    %c0_38 = arith.constant 0 : index
    %87 = vector.load %arg14[%c28, %c0_38] : memref<36x256xbf16, #tpu.memory_space<vmem>>, vector<4x256xbf16>
    tpu.vector_store %arg14[%c28, %c0_38], %86 {strides = array<i32>} : memref<36x256xbf16, #tpu.memory_space<vmem>>, vector<4x256xbf16>,
    %c239_i32 = arith.constant 239 : i32
    %88 = tpu.dynamic_rotate %32 by %c239_i32 dim 1 : vector<4x256xf32>, i32 -> vector<4x256xf32>
    %89 = arith.truncf %88 : vector<4x256xf32> to vector<4x256xbf16>
    %c8_39 = arith.constant 8 : index
    %c0_40 = arith.constant 0 : index
    %c0_41 = arith.constant 0 : index
    %90 = vector.load %arg2[%c8_39, %c0_40, %c0_41] : memref<9x1x256xbf16, #tpu.memory_space<vmem>>, vector<1x1x256xbf16>
    %91 = vector.shape_cast %90 : vector<1x1x256xbf16> to vector<1x256xbf16>
    %92 = vector.broadcast %91 : vector<1x256xbf16> to vector<4x256xbf16>
    %93 = arith.mulf %89, %92 : vector<4x256xbf16>
    %c32 = arith.constant 32 : index
    %c0_42 = arith.constant 0 : index
    %94 = vector.load %arg14[%c32, %c0_42] : memref<36x256xbf16, #tpu.memory_space<vmem>>, vector<4x256xbf16>
    tpu.vector_store %arg14[%c32, %c0_42], %93 {strides = array<i32>} : memref<36x256xbf16, #tpu.memory_space<vmem>>, vector<4x256xbf16>,
    %c0_43 = arith.constant 0 : index
    %c0_44 = arith.constant 0 : index
    %95 = vector.load %arg14[%c0_43, %c0_44] : memref<36x256xbf16, #tpu.memory_space<vmem>>, vector<36x256xbf16>
    %c0_45 = arith.constant 0 : index
    %c0_46 = arith.constant 0 : index
    %96 = vector.load %arg7[%c0_45, %c0_46] : memref<8x36xbf16, #tpu.memory_space<vmem>>, vector<8x36xbf16>
    %cst_47 = arith.constant dense<0.000000e+00> : vector<8x256xf32>
    %97 = tpu.matmul %96, %95, %cst_47 {dimension_numbers = #tpu.dot_dimension_numbers<[1], [0], [0], [1], [0, 0, 1, 1], [], []>} : vector<8x36xbf16>, vector<36x256xbf16>, vector<8x256xf32> -> vector<8x256xf32>
    %c0_48 = arith.constant 0 : index
    %c0_49 = arith.constant 0 : index
    %98 = vector.load %arg8[%c0_48, %c0_49] : memref<8x1xf32, #tpu.memory_space<vmem>>, vector<8x1xf32>
    %99 = vector.broadcast %98 : vector<8x1xf32> to vector<8x256xf32>
    %100 = arith.addf %97, %99 : vector<8x256xf32>
    %c0_50 = arith.constant 0 : index
    %c0_51 = arith.constant 0 : index
    %101 = vector.load %arg9[%c0_50, %c0_51] : memref<8x1xf32, #tpu.memory_space<vmem>>, vector<8x1xf32>
    %c0_52 = arith.constant 0 : index
    %c0_53 = arith.constant 0 : index
    %102 = vector.load %arg10[%c0_52, %c0_53] : memref<8x1xf32, #tpu.memory_space<vmem>>, vector<8x1xf32>
    %cst_54 = arith.constant dense<0.000000e+00> : vector<256xf32>
    %103 = vector.multi_reduction <add>, %100, %cst_54 [0] : vector<8x256xf32> to vector<256xf32>
    %104 = vector.shape_cast %103 : vector<256xf32> to vector<1x256xf32>
    %cst_55 = arith.constant 8.000000e+00 : f32
    %105 = vector.broadcast %cst_55 : f32 to vector<1x256xf32>
    %106 = arith.divf %104, %105 : vector<1x256xf32>
    %107 = vector.broadcast %106 : vector<1x256xf32> to vector<8x256xf32>
    %108 = arith.subf %100, %107 : vector<8x256xf32>
    %109 = arith.mulf %108, %108 : vector<8x256xf32>
    %cst_56 = arith.constant dense<0.000000e+00> : vector<256xf32>
    %110 = vector.multi_reduction <add>, %109, %cst_56 [0] : vector<8x256xf32> to vector<256xf32>
    %111 = vector.shape_cast %110 : vector<256xf32> to vector<1x256xf32>
    %cst_57 = arith.constant 8.000000e+00 : f32
    %112 = vector.broadcast %cst_57 : f32 to vector<1x256xf32>
    %113 = arith.divf %111, %112 : vector<1x256xf32>
    %114 = vector.broadcast %106 : vector<1x256xf32> to vector<8x256xf32>
    %115 = arith.subf %100, %114 : vector<8x256xf32>
    %cst_58 = arith.constant 9.99999974E-6 : f32
    %116 = vector.broadcast %cst_58 : f32 to vector<1x256xf32>
    %117 = arith.addf %113, %116 : vector<1x256xf32>
    %118 = math.rsqrt %117 : vector<1x256xf32>
    %119 = vector.broadcast %118 : vector<1x256xf32> to vector<8x256xf32>
    %120 = arith.mulf %115, %119 : vector<8x256xf32>
    %121 = vector.broadcast %101 : vector<8x1xf32> to vector<8x256xf32>
    %122 = arith.mulf %120, %121 : vector<8x256xf32>
    %123 = vector.broadcast %102 : vector<8x1xf32> to vector<8x256xf32>
    %124 = arith.addf %122, %123 : vector<8x256xf32>
    %cst_59 = arith.constant 5.000000e-01 : f32
    %125 = vector.broadcast %cst_59 : f32 to vector<8x256xf32>
    %126 = arith.mulf %125, %124 : vector<8x256xf32>
    %cst_60 = arith.constant 0.707106769 : f32
    %127 = vector.broadcast %cst_60 : f32 to vector<8x256xf32>
    %128 = arith.mulf %124, %127 : vector<8x256xf32>
    %129 = math.erf %128 : vector<8x256xf32>
    %cst_61 = arith.constant 1.000000e+00 : f32
    %130 = vector.broadcast %cst_61 : f32 to vector<8x256xf32>
    %131 = arith.addf %130, %129 : vector<8x256xf32>
    %132 = arith.mulf %126, %131 : vector<8x256xf32>
    %c17_i32_62 = arith.constant 17 : i32
    %133 = tpu.dynamic_rotate %132 by %c17_i32_62 dim 1 : vector<8x256xf32>, i32 -> vector<8x256xf32>
    %134 = arith.truncf %133 : vector<8x256xf32> to vector<8x256xbf16>
    %c0_63 = arith.constant 0 : index
    %c0_64 = arith.constant 0 : index
    %c0_65 = arith.constant 0 : index
    %135 = vector.load %arg2[%c0_63, %c0_64, %c0_65] : memref<9x1x256xbf16, #tpu.memory_space<vmem>>, vector<1x1x256xbf16>
    %136 = vector.shape_cast %135 : vector<1x1x256xbf16> to vector<1x256xbf16>
    %137 = vector.broadcast %136 : vector<1x256xbf16> to vector<8x256xbf16>
    %138 = arith.mulf %134, %137 : vector<8x256xbf16>
    %c0_66 = arith.constant 0 : index
    %c0_67 = arith.constant 0 : index
    %139 = vector.load %arg15[%c0_66, %c0_67] : memref<72x256xbf16, #tpu.memory_space<vmem>>, vector<8x256xbf16>
    tpu.vector_store %arg15[%c0_66, %c0_67], %138 {strides = array<i32>} : memref<72x256xbf16, #tpu.memory_space<vmem>>, vector<8x256xbf16>,
    %c16_i32_68 = arith.constant 16 : i32
    %140 = tpu.dynamic_rotate %132 by %c16_i32_68 dim 1 : vector<8x256xf32>, i32 -> vector<8x256xf32>
    %141 = arith.truncf %140 : vector<8x256xf32> to vector<8x256xbf16>
    %c1_69 = arith.constant 1 : index
    %c0_70 = arith.constant 0 : index
    %c0_71 = arith.constant 0 : index
    %142 = vector.load %arg2[%c1_69, %c0_70, %c0_71] : memref<9x1x256xbf16, #tpu.memory_space<vmem>>, vector<1x1x256xbf16>
    %143 = vector.shape_cast %142 : vector<1x1x256xbf16> to vector<1x256xbf16>
    %144 = vector.broadcast %143 : vector<1x256xbf16> to vector<8x256xbf16>
    %145 = arith.mulf %141, %144 : vector<8x256xbf16>
    %c8_72 = arith.constant 8 : index
    %c0_73 = arith.constant 0 : index
    %146 = vector.load %arg15[%c8_72, %c0_73] : memref<72x256xbf16, #tpu.memory_space<vmem>>, vector<8x256xbf16>
    tpu.vector_store %arg15[%c8_72, %c0_73], %145 {strides = array<i32>} : memref<72x256xbf16, #tpu.memory_space<vmem>>, vector<8x256xbf16>,
    %c15_i32_74 = arith.constant 15 : i32
    %147 = tpu.dynamic_rotate %132 by %c15_i32_74 dim 1 : vector<8x256xf32>, i32 -> vector<8x256xf32>
    %148 = arith.truncf %147 : vector<8x256xf32> to vector<8x256xbf16>
    %c2_75 = arith.constant 2 : index
    %c0_76 = arith.constant 0 : index
    %c0_77 = arith.constant 0 : index
    %149 = vector.load %arg2[%c2_75, %c0_76, %c0_77] : memref<9x1x256xbf16, #tpu.memory_space<vmem>>, vector<1x1x256xbf16>
    %150 = vector.shape_cast %149 : vector<1x1x256xbf16> to vector<1x256xbf16>
    %151 = vector.broadcast %150 : vector<1x256xbf16> to vector<8x256xbf16>
    %152 = arith.mulf %148, %151 : vector<8x256xbf16>
    %c16_78 = arith.constant 16 : index
    %c0_79 = arith.constant 0 : index
    %153 = vector.load %arg15[%c16_78, %c0_79] : memref<72x256xbf16, #tpu.memory_space<vmem>>, vector<8x256xbf16>
    tpu.vector_store %arg15[%c16_78, %c0_79], %152 {strides = array<i32>} : memref<72x256xbf16, #tpu.memory_space<vmem>>, vector<8x256xbf16>,
    %c1_i32_80 = arith.constant 1 : i32
    %154 = tpu.dynamic_rotate %132 by %c1_i32_80 dim 1 : vector<8x256xf32>, i32 -> vector<8x256xf32>
    %155 = arith.truncf %154 : vector<8x256xf32> to vector<8x256xbf16>
    %c3_81 = arith.constant 3 : index
    %c0_82 = arith.constant 0 : index
    %c0_83 = arith.constant 0 : index
    %156 = vector.load %arg2[%c3_81, %c0_82, %c0_83] : memref<9x1x256xbf16, #tpu.memory_space<vmem>>, vector<1x1x256xbf16>
    %157 = vector.shape_cast %156 : vector<1x1x256xbf16> to vector<1x256xbf16>
    %158 = vector.broadcast %157 : vector<1x256xbf16> to vector<8x256xbf16>
    %159 = arith.mulf %155, %158 : vector<8x256xbf16>
    %c24_84 = arith.constant 24 : index
    %c0_85 = arith.constant 0 : index
    %160 = vector.load %arg15[%c24_84, %c0_85] : memref<72x256xbf16, #tpu.memory_space<vmem>>, vector<8x256xbf16>
    tpu.vector_store %arg15[%c24_84, %c0_85], %159 {strides = array<i32>} : memref<72x256xbf16, #tpu.memory_space<vmem>>, vector<8x256xbf16>,
    %161 = arith.truncf %132 : vector<8x256xf32> to vector<8x256xbf16>
    %c4_86 = arith.constant 4 : index
    %c0_87 = arith.constant 0 : index
    %c0_88 = arith.constant 0 : index
    %162 = vector.load %arg2[%c4_86, %c0_87, %c0_88] : memref<9x1x256xbf16, #tpu.memory_space<vmem>>, vector<1x1x256xbf16>
    %163 = vector.shape_cast %162 : vector<1x1x256xbf16> to vector<1x256xbf16>
    %164 = vector.broadcast %163 : vector<1x256xbf16> to vector<8x256xbf16>
    %165 = arith.mulf %161, %164 : vector<8x256xbf16>
    %c32_89 = arith.constant 32 : index
    %c0_90 = arith.constant 0 : index
    %166 = vector.load %arg15[%c32_89, %c0_90] : memref<72x256xbf16, #tpu.memory_space<vmem>>, vector<8x256xbf16>
    tpu.vector_store %arg15[%c32_89, %c0_90], %165 {strides = array<i32>} : memref<72x256xbf16, #tpu.memory_space<vmem>>, vector<8x256xbf16>,
    %c255_i32_91 = arith.constant 255 : i32
    %167 = tpu.dynamic_rotate %132 by %c255_i32_91 dim 1 : vector<8x256xf32>, i32 -> vector<8x256xf32>
    %168 = arith.truncf %167 : vector<8x256xf32> to vector<8x256xbf16>
    %c5_92 = arith.constant 5 : index
    %c0_93 = arith.constant 0 : index
    %c0_94 = arith.constant 0 : index
    %169 = vector.load %arg2[%c5_92, %c0_93, %c0_94] : memref<9x1x256xbf16, #tpu.memory_space<vmem>>, vector<1x1x256xbf16>
    %170 = vector.shape_cast %169 : vector<1x1x256xbf16> to vector<1x256xbf16>
    %171 = vector.broadcast %170 : vector<1x256xbf16> to vector<8x256xbf16>
    %172 = arith.mulf %168, %171 : vector<8x256xbf16>
    %c40 = arith.constant 40 : index
    %c0_95 = arith.constant 0 : index
    %173 = vector.load %arg15[%c40, %c0_95] : memref<72x256xbf16, #tpu.memory_space<vmem>>, vector<8x256xbf16>
    tpu.vector_store %arg15[%c40, %c0_95], %172 {strides = array<i32>} : memref<72x256xbf16, #tpu.memory_space<vmem>>, vector<8x256xbf16>,
    %c241_i32_96 = arith.constant 241 : i32
    %174 = tpu.dynamic_rotate %132 by %c241_i32_96 dim 1 : vector<8x256xf32>, i32 -> vector<8x256xf32>
    %175 = arith.truncf %174 : vector<8x256xf32> to vector<8x256xbf16>
    %c6_97 = arith.constant 6 : index
    %c0_98 = arith.constant 0 : index
    %c0_99 = arith.constant 0 : index
    %176 = vector.load %arg2[%c6_97, %c0_98, %c0_99] : memref<9x1x256xbf16, #tpu.memory_space<vmem>>, vector<1x1x256xbf16>
    %177 = vector.shape_cast %176 : vector<1x1x256xbf16> to vector<1x256xbf16>
    %178 = vector.broadcast %177 : vector<1x256xbf16> to vector<8x256xbf16>
    %179 = arith.mulf %175, %178 : vector<8x256xbf16>
    %c48 = arith.constant 48 : index
    %c0_100 = arith.constant 0 : index
    %180 = vector.load %arg15[%c48, %c0_100] : memref<72x256xbf16, #tpu.memory_space<vmem>>, vector<8x256xbf16>
    tpu.vector_store %arg15[%c48, %c0_100], %179 {strides = array<i32>} : memref<72x256xbf16, #tpu.memory_space<vmem>>, vector<8x256xbf16>,
    %c240_i32_101 = arith.constant 240 : i32
    %181 = tpu.dynamic_rotate %132 by %c240_i32_101 dim 1 : vector<8x256xf32>, i32 -> vector<8x256xf32>
    %182 = arith.truncf %181 : vector<8x256xf32> to vector<8x256xbf16>
    %c7_102 = arith.constant 7 : index
    %c0_103 = arith.constant 0 : index
    %c0_104 = arith.constant 0 : index
    %183 = vector.load %arg2[%c7_102, %c0_103, %c0_104] : memref<9x1x256xbf16, #tpu.memory_space<vmem>>, vector<1x1x256xbf16>
    %184 = vector.shape_cast %183 : vector<1x1x256xbf16> to vector<1x256xbf16>
    %185 = vector.broadcast %184 : vector<1x256xbf16> to vector<8x256xbf16>
    %186 = arith.mulf %182, %185 : vector<8x256xbf16>
    %c56 = arith.constant 56 : index
    %c0_105 = arith.constant 0 : index
    %187 = vector.load %arg15[%c56, %c0_105] : memref<72x256xbf16, #tpu.memory_space<vmem>>, vector<8x256xbf16>
    tpu.vector_store %arg15[%c56, %c0_105], %186 {strides = array<i32>} : memref<72x256xbf16, #tpu.memory_space<vmem>>, vector<8x256xbf16>,
    %c239_i32_106 = arith.constant 239 : i32
    %188 = tpu.dynamic_rotate %132 by %c239_i32_106 dim 1 : vector<8x256xf32>, i32 -> vector<8x256xf32>
    %189 = arith.truncf %188 : vector<8x256xf32> to vector<8x256xbf16>
    %c8_107 = arith.constant 8 : index
    %c0_108 = arith.constant 0 : index
    %c0_109 = arith.constant 0 : index
    %190 = vector.load %arg2[%c8_107, %c0_108, %c0_109] : memref<9x1x256xbf16, #tpu.memory_space<vmem>>, vector<1x1x256xbf16>
    %191 = vector.shape_cast %190 : vector<1x1x256xbf16> to vector<1x256xbf16>
    %192 = vector.broadcast %191 : vector<1x256xbf16> to vector<8x256xbf16>
    %193 = arith.mulf %189, %192 : vector<8x256xbf16>
    %c64 = arith.constant 64 : index
    %c0_110 = arith.constant 0 : index
    %194 = vector.load %arg15[%c64, %c0_110] : memref<72x256xbf16, #tpu.memory_space<vmem>>, vector<8x256xbf16>
    tpu.vector_store %arg15[%c64, %c0_110], %193 {strides = array<i32>} : memref<72x256xbf16, #tpu.memory_space<vmem>>, vector<8x256xbf16>,
    %c0_111 = arith.constant 0 : index
    %c0_112 = arith.constant 0 : index
    %195 = vector.load %arg15[%c0_111, %c0_112] : memref<72x256xbf16, #tpu.memory_space<vmem>>, vector<72x256xbf16>
    %c0_113 = arith.constant 0 : index
    %c0_114 = arith.constant 0 : index
    %196 = vector.load %arg11[%c0_113, %c0_114] : memref<8x72xbf16, #tpu.memory_space<vmem>>, vector<8x72xbf16>
    %cst_115 = arith.constant dense<0.000000e+00> : vector<8x256xf32>
    %197 = tpu.matmul %196, %195, %cst_115 {dimension_numbers = #tpu.dot_dimension_numbers<[1], [0], [0], [1], [0, 0, 1, 1], [], []>} : vector<8x72xbf16>, vector<72x256xbf16>, vector<8x256xf32> -> vector<8x256xf32>
    %c0_116 = arith.constant 0 : index
    %c0_117 = arith.constant 0 : index
    %198 = vector.load %arg12[%c0_116, %c0_117] : memref<8x1xf32, #tpu.memory_space<vmem>>, vector<8x1xf32>
    %199 = vector.broadcast %198 : vector<8x1xf32> to vector<8x256xf32>
    %200 = arith.addf %197, %199 : vector<8x256xf32>
    %c0_118 = arith.constant 0 : index
    %c0_119 = arith.constant 0 : index
    %201 = vector.load %arg3[%c0_118, %c0_119] : memref<8x4xbf16, #tpu.memory_space<vmem>>, vector<8x4xbf16>
    %c0_120 = arith.constant 0 : index
    %c0_121 = arith.constant 0 : index
    %202 = vector.load %arg1[%c0_120, %c0_121] : memref<4x256xf32, #tpu.memory_space<vmem>>, vector<4x256xf32>
    %203 = arith.truncf %202 : vector<4x256xf32> to vector<4x256xbf16>
    %cst_122 = arith.constant dense<0.000000e+00> : vector<8x256xf32>
    %204 = tpu.matmul %201, %203, %cst_122 {dimension_numbers = #tpu.dot_dimension_numbers<[1], [0], [0], [1], [0, 0, 1, 1], [], []>} : vector<8x4xbf16>, vector<4x256xbf16>, vector<8x256xf32> -> vector<8x256xf32>
    %c0_123 = arith.constant 0 : index
    %c0_124 = arith.constant 0 : index
    %205 = vector.load %arg4[%c0_123, %c0_124] : memref<8x1xf32, #tpu.memory_space<vmem>>, vector<8x1xf32>
    %206 = vector.broadcast %205 : vector<8x1xf32> to vector<8x256xf32>
    %207 = arith.addf %204, %206 : vector<8x256xf32>
    %208 = arith.addf %200, %207 : vector<8x256xf32>
    %c0_125 = arith.constant 0 : index
    %c0_126 = arith.constant 0 : index
    %209 = vector.load %arg13[%c0_125, %c0_126] : memref<8x256xf32, #tpu.memory_space<vmem>>, vector<8x256xf32>
    tpu.vector_store %arg13[%c0_125, %c0_126], %208 {strides = array<i32>} : memref<8x256xf32, #tpu.memory_space<vmem>>, vector<8x256xf32>,
    return
  }
  func.func @transform_0(%arg0: i32) -> (i32, i32) {
    %c0_i32 = arith.constant 0 : i32
    %c0_i32_0 = arith.constant 0 : i32
    return %c0_i32, %arg0 : i32, i32
  }
  func.func @transform_1(%arg0: i32) -> (i32, i32, i32) {
    %c0_i32 = arith.constant 0 : i32
    %c0_i32_0 = arith.constant 0 : i32
    %c0_i32_1 = arith.constant 0 : i32
    %c0_i32_2 = arith.constant 0 : i32
    return %c0_i32, %c0_i32_0, %c0_i32_1 : i32, i32, i32
  }
  func.func @transform_2(%arg0: i32) -> (i32, i32) {
    %c0_i32 = arith.constant 0 : i32
    %c0_i32_0 = arith.constant 0 : i32
    %c0_i32_1 = arith.constant 0 : i32
    return %c0_i32, %c0_i32_0 : i32, i32
  }
  func.func @transform_3(%arg0: i32) -> (i32, i32) {
    %c0_i32 = arith.constant 0 : i32
    %c0_i32_0 = arith.constant 0 : i32
    %c0_i32_1 = arith.constant 0 : i32
    return %c0_i32, %c0_i32_0 : i32, i32
  }
  func.func @transform_4(%arg0: i32) -> (i32, i32) {
    %c0_i32 = arith.constant 0 : i32
    %c0_i32_0 = arith.constant 0 : i32
    %c0_i32_1 = arith.constant 0 : i32
    return %c0_i32, %c0_i32_0 : i32, i32
  }
  func.func @transform_5(%arg0: i32) -> (i32, i32) {
    %c0_i32 = arith.constant 0 : i32
    %c0_i32_0 = arith.constant 0 : i32
    %c0_i32_1 = arith.constant 0 : i32
    return %c0_i32, %c0_i32_0 : i32, i32
  }
  func.func @transform_6(%arg0: i32) -> (i32, i32) {
    %c0_i32 = arith.constant 0 : i32
    %c0_i32_0 = arith.constant 0 : i32
    %c0_i32_1 = arith.constant 0 : i32
    return %c0_i32, %c0_i32_0 : i32, i32
  }
  func.func @transform_7(%arg0: i32) -> (i32, i32) {
    %c0_i32 = arith.constant 0 : i32
    %c0_i32_0 = arith.constant 0 : i32
    %c0_i32_1 = arith.constant 0 : i32
    return %c0_i32, %c0_i32_0 : i32, i32
  }
  func.func @transform_8(%arg0: i32) -> (i32, i32) {
    %c0_i32 = arith.constant 0 : i32
    %c0_i32_0 = arith.constant 0 : i32
    %c0_i32_1 = arith.constant 0 : i32
    return %c0_i32, %c0_i32_0 : i32, i32
  }
  func.func @transform_9(%arg0: i32) -> (i32, i32) {
    %c0_i32 = arith.constant 0 : i32
    %c0_i32_0 = arith.constant 0 : i32
    %c0_i32_1 = arith.constant 0 : i32
    return %c0_i32, %c0_i32_0 : i32, i32
  }
  func.func @transform_10(%arg0: i32) -> (i32, i32) {
    %c0_i32 = arith.constant 0 : i32
    %c0_i32_0 = arith.constant 0 : i32
    %c0_i32_1 = arith.constant 0 : i32
    return %c0_i32, %c0_i32_0 : i32, i32
  }
  func.func @transform_11(%arg0: i32) -> (i32, i32) {
    %c0_i32 = arith.constant 0 : i32
    %c0_i32_0 = arith.constant 0 : i32
    %c0_i32_1 = arith.constant 0 : i32
    return %c0_i32, %c0_i32_0 : i32, i32
  }
  func.func @transform_12(%arg0: i32) -> (i32, i32) {
    %c0_i32 = arith.constant 0 : i32
    %c0_i32_0 = arith.constant 0 : i32
    return %c0_i32, %arg0 : i32, i32
  }
}

</mosaic_0001>

<bundles_post_ra>
// kernel: tpu_custom_call.1
= control target key start
LH: loop header
LB: loop body
LE: loop exit
PB: predicated region body
PF: predicated region fallthrough
CT: control target
= control target key end

     0   :  { %s2708_s0 = inlined_call_operand.vmem [shape: f32[4,512], index: 0, kind: input, shape index: {}]   ;;  %s2709_s1 = inlined_call_operand.vmem [shape: bf16[9,1,256], index: 1, kind: input, shape index: {}]   ;;  %s2710_s2 = inlined_call_operand.vmem [shape: bf16[8,4], index: 2, kind: input, shape index: {}]   ;;  %s2711_s3 = inlined_call_operand.vmem [shape: f32[8,1], index: 3, kind: input, shape index: {}]   ;;  %s2712_s4 = inlined_call_operand.vmem [shape: f32[4,1], index: 4, kind: input, shape index: {}]   ;;  %s2713_s5 = inlined_call_operand.vmem [shape: f32[4,1], index: 5, kind: input, shape index: {}]   ;;  %s2714_s6 = inlined_call_operand.vmem [shape: bf16[8,36], index: 6, kind: input, shape index: {}]   ;;  %s2715_s7 = inlined_call_operand.vmem [shape: f32[8,1], index: 7, kind: input, shape index: {}]   ;;  %s2716_s8 = inlined_call_operand.vmem [shape: f32[8,1], index: 8, kind: input, shape index: {}]   ;;  %s2717_s9 = inlined_call_operand.vmem [shape: f32[8,1], index: 9, kind: input, shape index: {}]   ;;  %s2718_s10 = inlined_call_operand.vmem [shape: bf16[8,72], index: 10, kind: input, shape index: {}]   ;;  %s2719_s11 = inlined_call_operand.vmem [shape: f32[8,1], index: 11, kind: input, shape index: {}]   ;;  %s2720_s12 = inlined_call_operand.hbm [shape: f32[8,512], index: 12, kind: output, shape index: {}]  }
   0x1   :  { %2729 = sst [smem:[#allocation7_spill]] %s2708_s0 }
   0x2   :  { %2730 = sst [smem:[#allocation8_spill]] %s2709_s1 }
   0x3   :  { %17 = vsyncpa [#allocation5], 0 }
   0x4   :  { %19 = vsyncpa [#allocation5 + $0x1], 0  ;;  %s2307_s21 = smov 0   ;;  %s2309_s22 = smov 0  }
   0x5   :  { %s2311_s23 = smov 0   ;;  %s2313_s24 = smov 0  }
   0x6 LB: > { %s2328_s25 = sadd.s32 4294967295, %s2228_s24   ;;  %s1916_s26 = sadd.s32 4294967294, %s2228_s24   ;;  %s2228_s24 = sphi %s2313_s24, %s2746_s24   ;;  %s2224_s23 = sphi %s2311_s23, %s2745_s23   ;;  %s2220_s22 = sphi %s2309_s22, %s2744_s22   ;;  %s2216_s21 = sphi %s2307_s21, %s2743_s21  }
   0x7   : > { %s2332_s27 = sadd.s32 1, %s2228_s24   ;;  %s289_s28 = sadd.s32 1, %s2224_s23 }
   0x8   : > { %s286_s29 = ssub.s32 %s2228_s24, %s2332_s27  ;;  %p299_p0 = scmp.ne.s32.totalorder %s2224_s23, %s2220_s22 }
   0x9   : > { %p287_p1 = scmp.eq.s32.totalorder %s286_s29, 0  ;;  %p300_p2 = scmp.eq.s32.totalorder %s2328_s25, 1 }
   0xa   : > { %p305_p3 = scmp.ne.s32.totalorder %s2220_s22, %s2216_s21  ;;  %p306_p4 = scmp.eq.s32.totalorder %s1916_s26, 1 }
   0xb   : > { %s2343_s30 = scalar_select %p287_p1, %s2224_s23, %s289_s28  }
   0xc   : > { %p2345_p5 = por %p300_p2, %p299_p0  ;;  %p2349_p6 = por %p306_p4, %p305_p3 }
   0xd   : > { %p1919_p7 = scmp.ge.s32.totalorder %s2228_s24, 1  ;;  %p366_p8 = scmp.lt.s32.totalorder %s2228_s24, 3 }
   0xf   : > { %p367_p9 = pnand %p1919_p7, %p366_p8 }
  0x10   : > { %s1921_s17 = sshll.u32 (!%p367_p9), %s2328_s25, 1  ;;  %s2733_s0 = sld [smem:[#allocation7_spill]] (!%p367_p9) }
  0x11   : > { %370 = sbr.rel (%p367_p9) target bundleno = 963 (0x3c3), region = 68  ;;  %p409_p10 = scmp.lt.s32.totalorder (!%p367_p9), %s1921_s17, 3 }
  0x12   : > { %s2734_s1 = sld [smem:[#allocation8_spill]] (!%p367_p9)  ;;  %s2725_s18 = smov (!%p367_p9), 111  }
  0x13   : > { %s2722_s19 = smov (!%p367_p9), 16   ;;  %s2724_s26 = smov (!%p367_p9), 17  }
  0x14   : > { %s2726_s28 = smov (!%p367_p9), 113   ;;  %s2727_s16 = smov (!%p367_p9), 1  }
  0x15   : > { %s2738_s15 = smov (!%p367_p9), 112  }
  0x16   : > { %v417_v0 = vld [vmem:[%s2712_s4] sm:$0xf]  ;;  %v2230_v1 = vmov 0   ;;  %s2748_s17 = smov (!%p409_p10, %s1921_s17), 3  ;;  %vm422_vm0 = vcmask 1043456   ;;  %v481_v45 = vlaneseq  ;;  %vm1060_vm9 = vcmask 1041408  }
  0x17   : > { %2063 = vset.pattern.permute.xlu0 %v2230_v1  ;;  %1099 = vmatprep.mubr.bf16.mxu0 %v2230_v1  ;;  %v418_v2 = vld [vmem:[%s2713_s5] sm:$0xf]  ;;  %s1922_s20 = sshll.u32 %s2748_s17, 2  ;;  %v2231_v43 = vmov 839922192   ;;  %s2721_s17 = smov 112  }
  0x18   : > { %476 = vperm.xlu0 %2063, %v417_v0   ;;  %2104 = vset.pattern.permute.xlu1 %v2230_v1  ;;  %s412_s29 = scalar_lea.vmem %s2733_s0, %s1922_s20  ;;  %v479_v44 = vunpack.c.l.s4 %v2231_v43  ;;  %v482_v48 = vshrl.u32 %v481_v45, 7  ;;  %v2232_v60 = vmov 1966171168   ;;  %s2723_s20 = smov 127   ;;  %vm1056_vm10 = vcmask 293888  }
  0x19   : > { %1765 = vmatprep.mubr.bf16.mxu1 %v2230_v1  ;;  %v2369_v3 = vld [vmem:[%s412_s29] sm:$0xff]  ;;  %v530_v61 = vunpack.c.l.s4 %v2232_v60  ;;  %v1935_v63 = vld.sshfl [vmem:[%s2734_s1 + $0x8] sm:$0x11 pattern:$0x75316420]  ;;  %vm1787_vm11 = vcmask 31744  }
  0x1a   : > { %v2373_v4 = vcombine.high %v2369_v3, %v2369_v3  ;;  %v423_v5 = vsel %vm422_vm0, %v2369_v3, 0.0  ;;  %v480_v47 = vunpack.c.0.s8 %v479_v44  ;;  %s2737_s29 = smov 127   ;;  %s2739_s0 = smov 1   ;;  %vm1723_vm12 = vcmask 588800  }
  0x1b   : > { %v424_v7 = vrot.slane %v423_v5, 4  ;;  %v531_v62 = vunpack.c.0.s8 %v530_v61 }
  0x1c   : > { %489 = vperm.xlu0 %2063, %v418_v2   ;;  %v430_v6 = vsel %vm422_vm0, %v2373_v4, 0.0  ;;  %v483_v50 = vsub.s32 %v480_v47, %v482_v48  ;;  %v751_v2 = vcombine.high %v1935_v63, %v1935_v63 }
  0x1d   : > { %v431_v8 = vrot.slane %v430_v6, 4  ;;  %v425_v9 = vadd.f32 %v424_v7, %v423_v5  ;;  %v2386_v0 = vsub.s32 %v531_v62, %v482_v48 }
  0x1f   : > { %v432_v10 = vadd.f32 %v431_v8, %v430_v6  ;;  %v426_v11 = vrot.slane %v425_v9, 2  ;;  %v758_v5 = vrot.slane %v1935_v63, %v2386_v0  ;;  %v765_v6 = vrot.slane %v751_v2, %v2386_v0 }
  0x21   : > { %v433_v12 = vrot.slane %v432_v10, 2  ;;  %v427_v13 = vadd.f32 %v426_v11, %v425_v9  ;;  %v767_v11 = vpack.i.b16 %v758_v5, %v758_v5 }
  0x23   : > { %v434_v14 = vadd.f32 %v433_v12, %v432_v10  ;;  %v428_v15 = vrot.slane %v427_v13, 1  ;;  %v2390_v10 = vsub.s32 0, %v482_v48  ;;  %v774_v12 = vpack.i.b16 %v765_v6, %v765_v6 }
  0x25   : > { %v435_v16 = vrot.slane %v434_v14, 1  ;;  %v429_v17 = vadd.f32 %v428_v15, %v427_v13 }
  0x27   : > { %v436_v18 = vadd.f32 %v435_v16, %v434_v14  ;;  %v438_v19 = vmul.f32 0.25, %v429_v17  ;;  %v2393_v16 = vrot.slane %v767_v11, %v2390_v10  ;;  %v2396_v17 = vrot.slane %v774_v12, %v2390_v10 }
  0x29   : > { %v439_v20 = vmul.f32 0.25, %v436_v18 }
  0x2b   : > { %v442_v21 = vcombine.low %v438_v19, %v439_v20 }
  0x2d   : > { %v444_v22 = vsub.f32 %v2369_v3, %v442_v21 }
  0x2f   : > { %v445_v23 = vmul.f32 %v444_v22, %v444_v22 }
  0x31   : > { %v447_v24 = vcombine.high %v445_v23, %v445_v23  ;;  %v449_v25 = vsel %vm422_vm0, %v445_v23, 0.0  ;;  %v1025_v23 = vld [vmem:[%s2715_s7] sm:$0xff] }
  0x32   : > { %v450_v27 = vrot.slane %v449_v25, 4 }
  0x33   : > { %v456_v26 = vsel %vm422_vm0, %v447_v24, 0.0  ;;  %v1109_v24 = vld [vmem:[%s2717_s9] sm:$0xff] }
  0x34   : > { %v457_v28 = vrot.slane %v456_v26, 4  ;;  %v451_v29 = vadd.f32 %v450_v27, %v449_v25  ;;  %v1108_v25 = vld [vmem:[%s2716_s8] sm:$0xff] }
  0x36   : > { %v458_v30 = vadd.f32 %v457_v28, %v456_v26  ;;  %v452_v31 = vrot.slane %v451_v29, 2  ;;  %v1944_v26 = vld.sshfl [vmem:[%s2734_s1 + $0xe] sm:$0x11 pattern:$0x75316420] }
  0x37   : > { %v923_v27 = vcombine.high %v1944_v26, %v1944_v26  ;;  %v1947_v28 = vld.sshfl [vmem:[%s2734_s1 + $0x10] sm:$0x11 pattern:$0x75316420] }
  0x38   : > { %v459_v32 = vrot.slane %v458_v30, 2  ;;  %v453_v33 = vadd.f32 %v452_v31, %v451_v29  ;;  %v930_v29 = vrot.slane %v1944_v26, %v2386_v0  ;;  %v1938_v31 = vld.sshfl [vmem:[%s2734_s1 + $0xa] sm:$0x11 pattern:$0x75316420]  ;;  %v988_v44 = vrot.slane %v1947_v28, %v2386_v0 }
  0x3a   : > { %v460_v34 = vadd.f32 %v459_v32, %v458_v30  ;;  %v454_v35 = vrot.slane %v453_v33, 1  ;;  %v1926_v30 = vld.sshfl [vmem:[%s2734_s1 + $0x2] sm:$0x11 pattern:$0x75316420] }
  0x3b   : > { %v1923_v32 = vld.sshfl [vmem:[%s2734_s1] sm:$0x11 pattern:$0x75316420] }
  0x3c   : > { %v461_v36 = vrot.slane %v460_v34, 1  ;;  %v455_v37 = vadd.f32 %v454_v35, %v453_v33  ;;  %v937_v33 = vrot.slane %v923_v27, %v2386_v0  ;;  %v1941_v35 = vld.sshfl [vmem:[%s2734_s1 + $0xc] sm:$0x11 pattern:$0x75316420] }
  0x3e   : > { %v462_v38 = vadd.f32 %v461_v36, %v460_v34  ;;  %v463_v39 = vmul.f32 0.25, %v455_v37  ;;  %v981_v34 = vcombine.high %v1947_v28, %v1947_v28  ;;  %v939_v36 = vpack.i.b16 %v930_v29, %v930_v29 }
  0x3f   : > { %v585_v37 = vcombine.high %v1926_v30, %v1926_v30  ;;  %v946_v43 = vpack.i.b16 %v937_v33, %v937_v33 }
  0x40   : > { %v464_v40 = vmul.f32 0.25, %v462_v38  ;;  %v465_v41 = vadd.f32 1e-05, %v463_v39  ;;  %v808_v38 = vcombine.high %v1938_v31, %v1938_v31  ;;  %v2446_v47 = vrot.slane %v939_v36, %v2390_v10 }
  0x41   : > { %v1932_v39 = vld.sshfl [vmem:[%s2734_s1 + $0x6] sm:$0x11 pattern:$0x75316420] }
  0x42   : > { %v466_v42 = vadd.f32 1e-05, %v464_v40  ;;  %2154 = vrsqrt.f32 %v465_v41  ;;  %v2441_v40 = vand.u32 127, %v481_v45  ;;  %v528_v41 = vcombine.high %v1923_v32, %v1923_v32 }
  0x43   : > { %v700_v48 = vcombine.high %v1932_v39, %v1932_v39  ;;  %v822_v45 = vrot.slane %v808_v38, %v2386_v0  ;;  %v707_v60 = vrot.slane %v1932_v39, %v2386_v0 }
  0x44   : > { %2156 = vrsqrt.f32 %v466_v42  ;;  %v866_v42 = vcombine.high %v1941_v35, %v1941_v35  ;;  %vm908_vm1 = vcmp.lt.s32.totalorder %v2441_v40, 112  ;;  %vm966_vm2 = vcmp.lt.s32.totalorder %v2441_v40, 111 }
  0x45   : > { %v714_v61 = vrot.slane %v700_v48, %v2386_v0  ;;  %vm570_vm3 = vcmp.lt.s32.totalorder %v2441_v40, 16  ;;  %vm793_vm4 = vcmp.lt.s32.totalorder %v2441_v40, 127  ;;  %vm514_vm5 = vcmp.lt.s32.totalorder %v2441_v40, 17 }
  0x46   : > { %vm851_vm6 = vcmp.lt.s32.totalorder %v2441_v40, 113  ;;  %vm685_vm7 = vcmp.lt.s32.totalorder %v2441_v40, 1  ;;  %vm628_vm8 = vcmp.lt.s32.totalorder %v2441_v40, 15 }
  0x4f   : > { %v2155_v46 = vpop.eup %2154 }
  0x51   : > { %v2157_v49 = vpop.eup %2156 }
  0x52   : > { %v471_v51 = vcombine.low %v2155_v46, %v2157_v49  ;;  %v995_v46 = vrot.slane %v981_v34, %v2386_v0  ;;  %v592_v49 = vrot.slane %v1926_v30, %v2386_v0 }
  0x54   : > { %v473_v53 = vmul.f32 %v471_v51, %v444_v22  ;;  %v815_v51 = vrot.slane %v1938_v31, %v2386_v0  ;;  %v601_v2 = vpack.i.b16 %v592_v49, %v592_v49 }
  0x56   : > { %v824_v6 = vpack.i.b16 %v815_v51, %v815_v51 }
  0x93   : > { %v477_v52 = vpop.permute.xlu0 %476 }
  0x94   : > { %v484_v54 = vrot.slane %v477_v52, %v483_v50  ;;  %v1929_v52 = vld.sshfl [vmem:[%s2734_s1 + $0x4] sm:$0x11 pattern:$0x75316420]  ;;  %s2241_s1 = smov [#allocation4]  }
  0x95   : > { %v643_v62 = vcombine.high %v1929_v52, %v1929_v52  ;;  %v650_v63 = vrot.slane %v1929_v52, %v2386_v0 }
  0x96   : > { %v486_v56 = vmul.f32 %v484_v54, %v473_v53  ;;  %v535_v53 = vrot.slane %v1923_v32, %v2386_v0  ;;  %v542_v54 = vrot.slane %v528_v41, %v2386_v0 }
  0x97   : > { %v490_v55 = vpop.permute.xlu0 %489 }
  0x98   : > { %v497_v57 = vrot.slane %v490_v55, %v483_v50  ;;  %v599_v50 = vrot.slane %v585_v37, %v2386_v0  ;;  %v873_v55 = vrot.slane %v1941_v35, %v2386_v0 }
  0x9a   : > { %v499_v58 = vadd.f32 %v497_v57, %v486_v56  ;;  %v880_v56 = vrot.slane %v866_v42, %v2386_v0  ;;  %v2461_v57 = vrot.slane %v946_v43, %v2390_v10  ;;  %v608_v5 = vpack.i.b16 %v599_v50, %v599_v50 }
  0x9b   : > { %v882_v11 = vpack.i.b16 %v873_v55, %v873_v55 }
  0x9c   : > { %v501_v59 = vmul.f32 0.70710677, %v499_v58  ;;  %v500_v8 = vmul.f32 0.5, %v499_v58  ;;  %v997_v58 = vpack.i.b16 %v988_v44, %v988_v44  ;;  %v889_v12 = vpack.i.b16 %v880_v56, %v880_v56 }
  0x9d   : > { %v2498_v28 = vrot.slane %v882_v11, %v2390_v10 }
  0x9e   : > { %2158 = verf.f32 %v501_v59  ;;  %v1004_v59 = vpack.i.b16 %v995_v46, %v995_v46  ;;  %v2501_v29 = vrot.slane %v889_v12, %v2390_v10 }
  0xab   : > { %v2159_v7 = vpop.eup %2158 }
  0xac   : > { %v503_v9 = vadd.f32 1.0, %v2159_v7  ;;  %v831_v7 = vpack.i.b16 %v822_v45, %v822_v45 }
  0xae   : > { %v504_v13 = vmul.f32 %v503_v9, %v500_v8  ;;  %v544_v8 = vpack.i.b16 %v535_v53, %v535_v53  ;;  %v551_v9 = vpack.i.b16 %v542_v54, %v542_v54 }
  0xb0   : > { %v506_v14 = vcombine.high %v504_v13, %v504_v13  ;;  %v739_v15 = vpack.c.bf16 %v504_v13, %v504_v13  ;;  %v2495_v27 = vrot.slane %v551_v9, %v2390_v10 }
  0xb2   : > { %v2074_v18 = vpack.i.bf16 %v506_v14, %v504_v13  ;;  %v740_v19 = vpack.c.bf16 %v506_v14, %v506_v14  ;;  %v780_v20 = vmul.bf16 %v2393_v16, %v739_v15  ;;  %v2468_v13 = vrot.slane %v997_v58, %v2390_v10 }
  0xb3   : > { %v2471_v14 = vrot.slane %v1004_v59, %v2390_v10  ;;  %v716_v15 = vpack.i.b16 %v707_v60, %v707_v60 }
  0xb4   : > { %2075 = vrot.lane.b32.xlu0 %v2074_v18, %s2721_s17  ;;  %2065 = vrot.lane.b32.xlu1 %v2074_v18, %s2725_s18  ;;  %v781_v21 = vmul.bf16 %v2396_v17, %v740_v19  ;;  %v2476_v19 = vrot.slane %v643_v62, %v2386_v0  ;;  %v2492_v0 = vrot.slane %v544_v8, %v2390_v10  ;;  %s2741_s17 = smov 16  }
  0xb5   : > { %v2504_v34 = vrot.slane %v716_v15, %v2390_v10 }
  0xb6   : > { %v1936_v22 = vcombine.low %v780_v20, %v781_v21  ;;  %v659_v20 = vpack.i.b16 %v650_v63, %v650_v63  ;;  %v2479_v21 = vrot.slane %v601_v2, %v2390_v10  ;;  %v666_v37 = vpack.i.b16 %v2476_v19, %v2476_v19 }
  0xb8   : > { %2085 = vrot.lane.b32.xlu0 %v2074_v18, %s2722_s19  ;;  %2070 = vrot.lane.b32.xlu1 %v2074_v18, %s2723_s20  ;;  %788 = vst [vmem:[#allocation2 + $0x20] sm:$0x33] %v1936_v22  ;;  %s2728_s20 = smov 15   ;;  %v2482_v22 = vrot.slane %v608_v5, %v2390_v10  ;;  %v2510_v36 = vrot.slane %v659_v20, %v2390_v10  ;;  %s2742_s19 = smov 17  }
  0xbc   : > { %2095 = vrot.lane.b32.xlu0 %v2074_v18, %s2724_s26  ;;  %2080 = vrot.lane.b32.xlu1 %v2074_v18, %s2726_s28  ;;  %s2735_s28 = smov 113  }
  0xc0   : > { %1028 = vperm.xlu0 %2063, %v1025_v23   ;;  %2090 = vrot.lane.b32.xlu1 %v2074_v18, %s2727_s16  ;;  %v2485_v23 = vrot.slane %v824_v6, %v2390_v10  ;;  %s2736_s16 = smov 111  }
  0xc4   : > { %1158 = vperm.xlu0 %2063, %v1109_v24   ;;  %2100 = vrot.lane.b32.xlu1 %v2074_v18, %s2728_s20  ;;  %v723_v18 = vpack.i.b16 %v714_v61, %v714_v61  ;;  %v2488_v24 = vrot.slane %v831_v7, %v2390_v10  ;;  %s2740_s20 = smov 15  }
  0xc6   : > { %v2507_v35 = vrot.slane %v723_v18, %v2390_v10 }
  0xc8   : > { %1151 = vperm.xlu1 %2104, %v1108_v25  }
 0x126   : > { %v2076_v25 = vpop.permute.xlu0 %2075  ;;  %v2066_v26 = vpop.permute.xlu1 %2065 }
 0x127   : > { %v2078_v30 = vunpack.i.h.bf16 %v2076_v25  ;;  %v2077_v31 = vunpack.i.l.bf16 %v2076_v25  ;;  %v2068_v32 = vunpack.i.h.bf16 %v2066_v26  ;;  %v2067_v33 = vunpack.i.l.bf16 %v2066_v26 }
 0x129   : > { %v909_v38 = vsel %vm908_vm1, %v2077_v31, %v2078_v30  ;;  %v910_v39 = vsel %vm908_vm1, %v2078_v30, %v2077_v31  ;;  %v967_v41 = vsel %vm966_vm2, %v2067_v33, %v2068_v32  ;;  %v968_v42 = vsel %vm966_vm2, %v2068_v32, %v2067_v33 }
 0x12a   : > { %v911_v43 = vpack.c.bf16 %v909_v38, %v909_v38  ;;  %v912_v44 = vpack.c.bf16 %v910_v39, %v910_v39  ;;  %v969_v46 = vpack.c.bf16 %v967_v41, %v967_v41  ;;  %v970_v48 = vpack.c.bf16 %v968_v42, %v968_v42  ;;  %v2086_v49 = vpop.permute.xlu0 %2085  ;;  %v2071_v50 = vpop.permute.xlu1 %2070 }
 0x12b   : > { %v2088_v51 = vunpack.i.h.bf16 %v2086_v49  ;;  %v2087_v45 = vunpack.i.l.bf16 %v2086_v49  ;;  %v2073_v52 = vunpack.i.h.bf16 %v2071_v50  ;;  %v2072_v53 = vunpack.i.l.bf16 %v2071_v50 }
 0x12c   : > { %v952_v54 = vmul.bf16 %v2446_v47, %v911_v43  ;;  %v953_v55 = vmul.bf16 %v2461_v57, %v912_v44  ;;  %v1010_v56 = vmul.bf16 %v2468_v13, %v969_v46  ;;  %v1011_v58 = vmul.bf16 %v2471_v14, %v970_v48 }
 0x12d   : > { %v571_v59 = vsel %vm570_vm3, %v2087_v45, %v2088_v51  ;;  %v572_v60 = vsel %vm570_vm3, %v2088_v51, %v2087_v45  ;;  %v794_v61 = vsel %vm793_vm4, %v2072_v53, %v2073_v52  ;;  %v795_v62 = vsel %vm793_vm4, %v2073_v52, %v2072_v53 }
 0x12e   : > { %v1945_v63 = vcombine.low %v952_v54, %v953_v55  ;;  %v1948_v2 = vcombine.low %v1010_v56, %v1011_v58  ;;  %v573_v5 = vpack.c.bf16 %v572_v60, %v572_v60  ;;  %v574_v6 = vpack.c.bf16 %v571_v59, %v571_v59  ;;  %v2096_v7 = vpop.permute.xlu0 %2095  ;;  %v2081_v8 = vpop.permute.xlu1 %2080 }
 0x12f   : > { %v796_v9 = vpack.c.bf16 %v794_v61, %v794_v61  ;;  %v797_v11 = vpack.c.bf16 %v795_v62, %v795_v62  ;;  %v2098_v12 = vunpack.i.h.bf16 %v2096_v7  ;;  %v2097_v15 = vunpack.i.l.bf16 %v2096_v7 }
 0x130   : > { %v959_v18 = vrot.slane %v1945_v63, 6  ;;  %1018 = vst [vmem:[#allocation2 + $0x18] sm:$0x33] %v1948_v2  ;;  %v614_v19 = vmul.bf16 %v2479_v21, %v573_v5  ;;  %v615_v20 = vmul.bf16 %v2482_v22, %v574_v6  ;;  %v2083_v25 = vunpack.i.h.bf16 %v2081_v8 }
 0x131   : > { %v837_v26 = vmul.bf16 %v2485_v23, %v796_v9  ;;  %v838_v30 = vmul.bf16 %v2488_v24, %v797_v11  ;;  %v515_v31 = vsel %vm514_vm5, %v2097_v15, %v2098_v12  ;;  %v516_v32 = vsel %vm514_vm5, %v2098_v12, %v2097_v15 }
 0x132   : > { %961 = vst [vmem:[#allocation2 + $0x10] sm:$0xcc] %v959_v18  ;;  %v1927_v33 = vcombine.low %v614_v19, %v615_v20  ;;  %v517_v38 = vpack.c.bf16 %v516_v32, %v516_v32  ;;  %v518_v39 = vpack.c.bf16 %v515_v31, %v515_v31  ;;  %v2082_v41 = vunpack.i.l.bf16 %v2081_v8  ;;  %v2091_v42 = vpop.permute.xlu1 %2090 }
 0x133   : > { %v1939_v43 = vcombine.low %v837_v26, %v838_v30  ;;  %v2093_v44 = vunpack.i.h.bf16 %v2091_v42  ;;  %v2092_v46 = vunpack.i.l.bf16 %v2091_v42  ;;  %v2546_v48 = vrot.slane %v666_v37, %v2390_v10  ;;  %v1024_v42 = vld [vmem:[%s2714_s6] sm:$0xf] }
 0x134   : > { %v621_v49 = vrot.slane %v1927_v33, 6  ;;  %v557_v50 = vmul.bf16 %v2492_v0, %v517_v38  ;;  %v558_v51 = vmul.bf16 %v2495_v27, %v518_v39  ;;  %v852_v45 = vsel %vm851_vm6, %v2082_v41, %v2083_v25 }
 0x135   : > { %v844_v52 = vrot.slane %v1939_v43, 6  ;;  %v853_v53 = vsel %vm851_vm6, %v2083_v25, %v2082_v41  ;;  %v854_v54 = vpack.c.bf16 %v852_v45, %v852_v45  ;;  %v686_v55 = vsel %vm685_vm7, %v2092_v46, %v2093_v44 }
 0x136   : > { %623 = vst [vmem:[#allocation2 + $0x8] sm:$0xcc] %v621_v49  ;;  %v1924_v56 = vcombine.low %v557_v50, %v558_v51  ;;  %v855_v10 = vpack.c.bf16 %v853_v53, %v853_v53  ;;  %v687_v37 = vsel %vm685_vm7, %v2093_v44, %v2092_v46  ;;  %v689_v58 = vpack.c.bf16 %v686_v55, %v686_v55  ;;  %v2101_v59 = vpop.permute.xlu1 %2100  ;;  %v1774_v49 = vld [vmem:[%s2710_s2] sm:$0xf] }
 0x137   : > { %846 = vst [vmem:[#allocation2 + $0x20] sm:$0xcc] %v844_v52  ;;  %v895_v60 = vmul.bf16 %v2498_v28, %v854_v54  ;;  %v688_v61 = vpack.c.bf16 %v687_v37, %v687_v37  ;;  %v2103_v62 = vunpack.i.h.bf16 %v2101_v59  ;;  %v2102_v63 = vunpack.i.l.bf16 %v2101_v59  ;;  %v1023_v2 = vld [vmem:[#allocation2 + $0x18] sm:$0x33] }
 0x138   : > { %565 = vst [vmem:[#allocation2 + $0x8] sm:$0x33] %v1924_v56  ;;  %v896_v5 = vmul.bf16 %v2501_v29, %v855_v10  ;;  %v730_v6 = vmul.bf16 %v2507_v35, %v689_v58  ;;  %v1954_v7 = vcombine.high %v1023_v2, %v1023_v2  ;;  %v1953_v8 = vcombine.low %v1023_v2, %v1023_v2 }
 0x139   : > { %v729_v9 = vmul.bf16 %v2504_v34, %v688_v61  ;;  %v629_v11 = vsel %vm628_vm8, %v2102_v63, %v2103_v62  ;;  %v630_v12 = vsel %vm628_vm8, %v2103_v62, %v2102_v63  ;;  %v1780_v43 = vpack.c.bf16 %v2373_v4, %v2373_v4 }
 0x13a   : > { %v1942_v15 = vcombine.low %v895_v60, %v896_v5  ;;  %v631_v18 = vpack.c.bf16 %v630_v12, %v630_v12  ;;  %v632_v19 = vpack.c.bf16 %v629_v11, %v629_v11  ;;  %1955 = vmatprep.subr.msk.bf16.mxu0 %vm1060_vm9, %v1954_v7  ;;  %v1062_v20 = vsel %vm1060_vm9, %v1953_v8, 0 }
 0x13b   : > { %v1933_v25 = vcombine.low %v729_v9, %v730_v6  ;;  %1078 = vmatpush1.bf16.msra.mxu0 %v1062_v20  ;;  %v1779_v44 = vpack.c.bf16 %v2369_v3, %v2369_v3  ;;  %v1029_v50 = vpop.permute.xlu0 %1028 }
 0x13c   : > { %903 = vst [vmem:[#allocation2 + $0x10] sm:$0x33] %v1942_v15  ;;  %v672_v26 = vmul.bf16 %v2510_v36, %v631_v18  ;;  %v673_v30 = vmul.bf16 %v2546_v48, %v632_v19 }
 0x13d   : > { %v736_v31 = vrot.slane %v1933_v25, 6  ;;  %v1792_v46 = vsel %vm1060_vm9, %v1779_v44, 0 }
 0x13e   : > { %v1930_v32 = vcombine.low %v672_v26, %v673_v30 }
 0x13f   : > { %738 = vst [vmem:[#allocation2] sm:$0xcc] %v736_v31 }
 0x140   : > { %680 = vst [vmem:[#allocation2] sm:$0x33] %v1930_v32 }
 0x143   : > { %v2148_v33 = vld [vmem:[#allocation2 + $0x24] ss:$-16 sps:$4 sm:$0xff]   ;;  %v2150_v38 = vld [vmem:[#allocation2 + $0x20] ss:$-16 sps:$4 sm:$0xff]   ;;  %v1152_v44 = vpop.permute.xlu1 %1151 }
 0x144   : > { %1079 = vmatprep.subr.bf16.mxu0 %v2148_v33 }
 0x145   : > { %1080 = vmatpush1.bf16.msra.mxu0 %v2150_v38 }
 0x147   : > { %v2151_v39 = vld [vmem:[#allocation2 + $0xc] ss:$-8 sps:$4 sm:$0xff]   ;;  %v2153_v41 = vld [vmem:[#allocation2 + $0x8] ss:$-8 sps:$4 sm:$0xff]  }
 0x148   : > { %1081 = vmatprep.subr.bf16.mxu0 %v2151_v39 }
 0x149   : > { %1082 = vmatpush1.bf16.msra.mxu0 %v2153_v41 }
 0x14a   : > { %1995 = vmatprep.subr.msk.bf16.mxu0 %vm1060_vm9, %v1780_v43 }
 0x14c   : > { %1956 = vmatmul.mubr.msk.bf16.vlgmr.msra.gmra.mxu0 %vm1056_vm10, %v1024_v42 }
 0x14d   : > { %1829 = vmatprep.mubr.bf16.mxu0 %v2230_v1  ;;  %1812 = vmatpush1.bf16.msra.mxu0 %v1792_v46 }
 0x154   : > { %1996 = vmatmul.mubr.msk.bf16.vlgmr.msra.gmra.mxu0 %vm1787_vm11, %v1774_v49 }
 0x20c   : > { %v1101_v51 = vpop.f32.mrf.mxu0 }
 0x20d   : > { %v1102_v1 = vadd.f32 %v1101_v51, %v1029_v50 }
 0x20e   : > { %v1103_v45 = vpop.f32.mrf.mxu0 }
 0x20f   : > { %v1110_v52 = vrot.slane %v1102_v1, 4  ;;  %v1104_v4 = vadd.f32 %v1103_v45, %v1029_v50 }
 0x210   : > { %v1105_v53 = vpop.f32.mrf.mxu0 }
 0x211   : > { %v1111_v54 = vadd.f32 %v1110_v52, %v1102_v1  ;;  %v1116_v3 = vrot.slane %v1104_v4, 4 }
 0x212   : > { %v1106_v55 = vpop.f32.mrf.mxu0 }
 0x213   : > { %v1112_v56 = vrot.slane %v1111_v54, 2  ;;  %v1117_v10 = vadd.f32 %v1116_v3, %v1104_v4 }
 0x215   : > { %v1113_v37 = vadd.f32 %v1112_v56, %v1111_v54  ;;  %v1118_v58 = vrot.slane %v1117_v10, 2 }
 0x217   : > { %v1114_v59 = vrot.slane %v1113_v37, 1  ;;  %v1119_v60 = vadd.f32 %v1118_v58, %v1117_v10 }
 0x219   : > { %v1115_v61 = vadd.f32 %v1114_v59, %v1113_v37  ;;  %v1120_v62 = vrot.slane %v1119_v60, 1 }
 0x21b   : > { %v1123_v63 = vmul.f32 0.125, %v1115_v61  ;;  %v1121_v2 = vadd.f32 %v1120_v62, %v1119_v60  ;;  %v1781_v62 = vld [vmem:[%s2711_s3] sm:$0xff] }
 0x21d   : > { %v1125_v5 = vsub.f32 %v1102_v1, %v1123_v63  ;;  %v1124_v6 = vmul.f32 0.125, %v1121_v2  ;;  %v1159_v1 = vpop.permute.xlu0 %1158  ;;  %v1672_v63 = vld [vmem:[%s2719_s11] sm:$0xff]  ;;  %v2603_v2 = vpop.f32.mrf.mxu0 }
 0x21f   : > { %v1127_v7 = vmul.f32 %v1125_v5, %v1125_v5  ;;  %v1126_v8 = vsub.f32 %v1104_v4, %v1124_v6 }
 0x221   : > { %v1129_v9 = vrot.slane %v1127_v7, 4  ;;  %v1128_v11 = vmul.f32 %v1126_v8, %v1126_v8 }
 0x223   : > { %v1130_v12 = vadd.f32 %v1129_v9, %v1127_v7  ;;  %v1135_v15 = vrot.slane %v1128_v11, 4 }
 0x225   : > { %v1131_v18 = vrot.slane %v1130_v12, 2  ;;  %v1136_v19 = vadd.f32 %v1135_v15, %v1128_v11 }
 0x227   : > { %v1132_v20 = vadd.f32 %v1131_v18, %v1130_v12  ;;  %v1137_v25 = vrot.slane %v1136_v19, 2 }
 0x229   : > { %v1133_v26 = vrot.slane %v1132_v20, 1  ;;  %v1138_v30 = vadd.f32 %v1137_v25, %v1136_v19 }
 0x22b   : > { %v1134_v31 = vadd.f32 %v1133_v26, %v1132_v20  ;;  %v1139_v32 = vrot.slane %v1138_v30, 1 }
 0x22d   : > { %v1141_v33 = vmul.f32 0.125, %v1134_v31  ;;  %v1140_v38 = vadd.f32 %v1139_v32, %v1138_v30 }
 0x22f   : > { %v1143_v39 = vadd.f32 1e-05, %v1141_v33  ;;  %v1142_v41 = vmul.f32 0.125, %v1140_v38 }
 0x231   : > { %2160 = vrsqrt.f32 %v1143_v39  ;;  %v1144_v42 = vadd.f32 1e-05, %v1142_v41 }
 0x233   : > { %2162 = vrsqrt.f32 %v1144_v42 }
 0x23e   : > { %v2161_v43 = vpop.eup %2160 }
 0x23f   : > { %v1147_v46 = vmul.f32 %v2161_v43, %v1125_v5  ;;  %v2605_v5 = vpop.f32.mrf.mxu0 }
 0x240   : > { %v2163_v49 = vpop.eup %2162 }
 0x241   : > { %v1148_v50 = vmul.f32 %v2163_v49, %v1126_v8  ;;  %v1154_v51 = vmul.f32 %v1152_v44, %v1147_v46  ;;  %v1835_v6 = vpop.f32.mrf.mxu0 }
 0x243   : > { %v1155_v45 = vmul.f32 %v1152_v44, %v1148_v50  ;;  %v1161_v52 = vadd.f32 %v1159_v1, %v1154_v51  ;;  %v1836_v7 = vpop.f32.mrf.mxu0 }
 0x245   : > { %v1162_v4 = vadd.f32 %v1159_v1, %v1155_v45  ;;  %v1165_v53 = vmul.f32 0.70710677, %v1161_v52  ;;  %v1163_v10 = vmul.f32 0.5, %v1161_v52 }
 0x247   : > { %v1166_v54 = vmul.f32 0.70710677, %v1162_v4  ;;  %2164 = verf.f32 %v1165_v53  ;;  %v1164_v37 = vmul.f32 0.5, %v1162_v4 }
 0x249   : > { %2166 = verf.f32 %v1166_v54 }
 0x254   : > { %v2165_v3 = vpop.eup %2164 }
 0x255   : > { %v1169_v55 = vadd.f32 1.0, %v2165_v3 }
 0x256   : > { %v2167_v56 = vpop.eup %2166 }
 0x257   : > { %v1170_v58 = vadd.f32 1.0, %v2167_v56  ;;  %v2583_v59 = vmul.f32 %v1169_v55, %v1163_v10 }
 0x259   : > { %v2585_v60 = vmul.f32 %v1170_v58, %v1164_v37  ;;  %v1393_v39 = vpack.c.bf16 %v2583_v59, %v2583_v59 }
 0x25b   : > { %v2110_v61 = vpack.i.bf16 %v2585_v60, %v2583_v59  ;;  %v1394_v51 = vpack.c.bf16 %v2585_v60, %v2585_v60 }
 0x25d   : > { %2111 = vrot.lane.b32.xlu0 %v2110_v61, %s2735_s28  ;;  %2106 = vrot.lane.b32.xlu1 %v2110_v61, %s2736_s16  ;;  %s2172_s16 = sshll.u32 %s2241_s1, 4  ;;  %s2173_s16 = int_to_ptr.vmem [resolvable:$false] %s2172_s16 }
 0x261   : > { %2121 = vrot.lane.b32.xlu0 %v2110_v61, %s2737_s29  ;;  %2116 = vrot.lane.b32.xlu1 %v2110_v61, %s2738_s15  ;;  %s405_s29 = sand.u32 1, %s2220_s22  }
 0x262   : > { %s1920_s15 = sshll.u32 %s405_s29, 4  ;;  %s1843_s28 = scalar_lea.sflag [#allocation5], %s405_s29 }
 0x265   : > { %2131 = vrot.lane.b32.xlu0 %v2110_v61, %s2739_s0  ;;  %2126 = vrot.lane.b32.xlu1 %v2110_v61, %s2740_s20  ;;  %s2002_s0 = sshll.u32 %s2328_s25, 8  ;;  %s407_s20 = scalar_lea.vmem [#allocation4], %s1920_s15 }
 0x266   : > { %s2673_s26 = scalar_lea.hbm %s2720_s12, %s2002_s0  ;;  %s2174_s15 = scalar_lea.vmem %s2173_s16, 512 }
 0x269   : > { %2141 = vrot.lane.b32.xlu0 %v2110_v61, %s2741_s17  ;;  %2136 = vrot.lane.b32.xlu1 %v2110_v61, %s2742_s19  ;;  %s1857_s17 = sshll.u32 %s407_s20, 4  ;;  %s1858_s17 = int_to_ptr.vmem [resolvable:$true] %s1857_s17 }
 0x26a   : > { %s2168_s25 = scalar_lea.vmem %s1858_s17, 256  ;;  %p2175_p0 = scmp.lt.s32.totalorder %s1858_s17, %s2173_s16 }
 0x26b   : > { %p2169_p11 = scmp.ne.s32.totalorder %s1858_s17, %s2168_s25  ;;  %p2176_p1 = scmp.lt.s32.totalorder %s2174_s15, %s2168_s25 }
 0x26d   : > { %1784 = vperm.xlu0 %2063, %v1781_v62   ;;  %1675 = vperm.xlu1 %2104, %v1672_v63   ;;  %p2170_p12 = pnand %p2169_p11, %p2345_p5  ;;  %p2177_p2 = por %p2176_p1, %p2175_p0 }
 0x26f   : > { %p2171_p13 = pneg %p2170_p12 }
 0x271   : > { %p2178_p3 = pnand %p2177_p2, %p2171_p13 }
 0x2cf   : > { %v2112_v8 = vpop.permute.xlu0 %2111  ;;  %v2107_v9 = vpop.permute.xlu1 %2106 }
 0x2d0   : > { %v2114_v11 = vunpack.i.h.bf16 %v2112_v8  ;;  %v2113_v12 = vunpack.i.l.bf16 %v2112_v8  ;;  %v2109_v15 = vunpack.i.h.bf16 %v2107_v9  ;;  %v2108_v18 = vunpack.i.l.bf16 %v2107_v9 }
 0x2d2   : > { %v1501_v19 = vsel %vm851_vm6, %v2113_v12, %v2114_v11  ;;  %v1502_v20 = vsel %vm851_vm6, %v2114_v11, %v2113_v12  ;;  %v1612_v25 = vsel %vm966_vm2, %v2109_v15, %v2108_v18  ;;  %v1611_v26 = vsel %vm966_vm2, %v2108_v18, %v2109_v15 }
 0x2d3   : > { %v1504_v30 = vpack.c.bf16 %v1502_v20, %v1502_v20  ;;  %v2122_v31 = vpop.permute.xlu0 %2121  ;;  %v2117_v32 = vpop.permute.xlu1 %2116  ;;  %v1614_v33 = vpack.c.bf16 %v1612_v25, %v1612_v25  ;;  %v1613_v38 = vpack.c.bf16 %v1611_v26, %v1611_v26  ;;  %v1503_v46 = vpack.c.bf16 %v1501_v19, %v1501_v19 }
 0x2d4   : > { %v2124_v41 = vunpack.i.h.bf16 %v2122_v31  ;;  %v2123_v42 = vunpack.i.l.bf16 %v2122_v31  ;;  %v2119_v43 = vunpack.i.h.bf16 %v2117_v32  ;;  %v2118_v44 = vunpack.i.l.bf16 %v2117_v32 }
 0x2d5   : > { %v1654_v49 = vmul.bf16 %v1614_v33, %v2471_v14  ;;  %v1653_v50 = vmul.bf16 %v1613_v38, %v2468_v13  ;;  %v1544_v4 = vmul.bf16 %v1504_v30, %v2501_v29  ;;  %v1543_v7 = vmul.bf16 %v1503_v46, %v2498_v28 }
 0x2d6   : > { %v1447_v1 = vsel %vm793_vm4, %v2124_v41, %v2123_v42  ;;  %v1556_v45 = vsel %vm908_vm1, %v2118_v44, %v2119_v43  ;;  %v1557_v52 = vsel %vm908_vm1, %v2119_v43, %v2118_v44  ;;  %v1446_v53 = vsel %vm793_vm4, %v2123_v42, %v2124_v41 }
 0x2d7   : > { %v1449_v14 = vpack.c.bf16 %v1447_v1, %v1447_v1  ;;  %v1558_v54 = vpack.c.bf16 %v1556_v45, %v1556_v45  ;;  %v1559_v13 = vpack.c.bf16 %v1557_v52, %v1557_v52  ;;  %v2132_v3 = vpop.permute.xlu0 %2131  ;;  %v2127_v55 = vpop.permute.xlu1 %2126  ;;  %v2012_v59 = vcombine.low %v1654_v49, %v1654_v49 }
 0x2d8   : > { %v2134_v56 = vunpack.i.h.bf16 %v2132_v3  ;;  %v2133_v10 = vunpack.i.l.bf16 %v2132_v3  ;;  %v2129_v37 = vunpack.i.h.bf16 %v2127_v55  ;;  %v2128_v58 = vunpack.i.l.bf16 %v2127_v55 }
 0x2d9   : > { %v2011_v60 = vcombine.low %v1653_v50, %v1653_v50  ;;  %v1599_v61 = vmul.bf16 %v1559_v13, %v2461_v57  ;;  %v1598_v62 = vmul.bf16 %v1558_v54, %v2446_v47  ;;  %v1448_v63 = vpack.c.bf16 %v1446_v53, %v1446_v53  ;;  %1993 = vmatprep.subr.msk.bf16.mxu1 %vm422_vm0, %v2012_v59 }
 0x2da   : > { %v1342_v29 = vsel %vm685_vm7, %v2133_v10, %v2134_v56  ;;  %v1287_v6 = vsel %vm628_vm8, %v2128_v58, %v2129_v37  ;;  %v1343_v8 = vsel %vm685_vm7, %v2134_v56, %v2133_v10  ;;  %v1288_v11 = vsel %vm628_vm8, %v2129_v37, %v2128_v58 }
 0x2db   : > { %v1345_v9 = vpack.c.bf16 %v1342_v29, %v1342_v29  ;;  %v1290_v12 = vpack.c.bf16 %v1287_v6, %v1287_v6  ;;  %v2142_v47 = vpop.permute.xlu0 %2141  ;;  %v2137_v57 = vpop.permute.xlu1 %2136  ;;  %v1728_v15 = vsel %vm422_vm0, %v2011_v60, 0  ;;  %v2010_v28 = vcombine.low %v1544_v4, %v1599_v61 }
 0x2dc   : > { %v2144_v18 = vunpack.i.h.bf16 %v2142_v47  ;;  %v2143_v19 = vunpack.i.l.bf16 %v2142_v47  ;;  %v2139_v20 = vunpack.i.h.bf16 %v2137_v57  ;;  %1740 = vmatpush1.bf16.msra.mxu1 %v1728_v15  ;;  %v2138_v25 = vunpack.i.l.bf16 %v2137_v57 }
 0x2dd   : > { %v2009_v26 = vcombine.low %v1543_v7, %v1598_v62  ;;  %v1489_v30 = vmul.bf16 %v1449_v14, %v2488_v24  ;;  %v1344_v31 = vpack.c.bf16 %v1343_v8, %v1343_v8  ;;  %v1289_v32 = vpack.c.bf16 %v1288_v11, %v1288_v11  ;;  %1741 = vmatprep.subr.bf16.mxu1 %v2010_v28 }
 0x2de   : > { %v1232_v33 = vsel %vm570_vm3, %v2143_v19, %v2144_v18  ;;  %v1434_v38 = vmul.bf16 %v1394_v51, %v2396_v17  ;;  %v1233_v41 = vsel %vm570_vm3, %v2144_v18, %v2143_v19  ;;  %v1177_v42 = vsel %vm514_vm5, %v2138_v25, %v2139_v20 }
 0x2df   : > { %v1488_v43 = vmul.bf16 %v1448_v63, %v2485_v23  ;;  %v1330_v44 = vmul.bf16 %v1290_v12, %v2546_v48  ;;  %v1235_v46 = vpack.c.bf16 %v1232_v33, %v1232_v33  ;;  %v1178_v24 = vsel %vm514_vm5, %v2139_v20, %v2138_v25 }
 0x2e0   : > { %v1180_v49 = vpack.c.bf16 %v1177_v42, %v1177_v42  ;;  %v2008_v50 = vcombine.low %v1434_v38, %v1489_v30  ;;  %1742 = vmatpush1.bf16.msra.mxu1 %v2009_v26  ;;  %v1433_v17 = vmul.bf16 %v1393_v39, %v2393_v16  ;;  %v1385_v51 = vmul.bf16 %v1345_v9, %v2507_v35 }
 0x2e1   : > { %v1234_v1 = vpack.c.bf16 %v1233_v41, %v1233_v41  ;;  %v1179_v45 = vpack.c.bf16 %v1178_v24, %v1178_v24  ;;  %v1329_v4 = vmul.bf16 %v1289_v32, %v2510_v36  ;;  %v1384_v23 = vmul.bf16 %v1344_v31, %v2504_v34  ;;  %v1671_v34 = vld [vmem:[%s2718_s10] sm:$0xf] }
 0x2e2   : > { %1743 = vmatprep.subr.bf16.mxu1 %v2008_v50  ;;  %v2007_v52 = vcombine.low %v1433_v17, %v1488_v43  ;;  %v2006_v48 = vcombine.low %v1330_v44, %v1385_v51  ;;  %v1220_v40 = vmul.bf16 %v1180_v49, %v2495_v27  ;;  %v1275_v53 = vmul.bf16 %v1235_v46, %v2482_v22 }
 0x2e3   : > { %v2005_v14 = vcombine.low %v1329_v4, %v1384_v23  ;;  %v1219_v16 = vmul.bf16 %v1179_v45, %v2492_v0  ;;  %v1274_v35 = vmul.bf16 %v1234_v1, %v2479_v21 }
 0x2e4   : > { %1744 = vmatpush1.bf16.msra.mxu1 %v2007_v52  ;;  %v2004_v39 = vcombine.low %v1220_v40, %v1275_v53 }
 0x2e5   : > { %1745 = vmatprep.subr.bf16.mxu1 %v2006_v48  ;;  %v2003_v36 = vcombine.low %v1219_v16, %v1274_v35 }
 0x2e8   : > { %1746 = vmatpush1.bf16.msra.mxu1 %v2005_v14  ;;  %v1785_v22 = vpop.permute.xlu0 %1784  ;;  %v1676_v27 = vpop.permute.xlu1 %1675 }
 0x2e9   : > { %1747 = vmatprep.subr.bf16.mxu1 %v2004_v39  ;;  %v1832_v0 = vadd.f32 %v2603_v2, %v1785_v22  ;;  %v1834_v3 = vadd.f32 %v2605_v5, %v1785_v22 }
 0x2ec   : > { %1748 = vmatpush1.bf16.msra.mxu1 %v2003_v36 }
 0x2ef   : > { %1994 = vmatmul.mubr.msk.bf16.vlgmr.msra.gmra.mxu1 %vm1723_vm12, %v1671_v34 }
 0x3af   : > { %v1767_v54 = vpop.f32.mrf.mxu1 }
 0x3b0   : > { %v1768_v21 = vadd.f32 %v1767_v54, %v1676_v27 }
 0x3b1   : > { %v1769_v13 = vpop.f32.mrf.mxu1 }
 0x3b2   : > { %v1838_v55 = vadd.f32 %v1832_v0, %v1768_v21  ;;  %v1770_v56 = vadd.f32 %v1769_v13, %v1676_v27 }
 0x3b3   : > { %v1771_v10 = vpop.f32.mrf.mxu1 }
 0x3b4   : > { %1840 = vst [vmem:[%s407_s20] sm:$0xff] %v1838_v55  ;;  %v1839_v37 = vadd.f32 %v1834_v3, %v1770_v56 }
 0x3b5   : > { %v1772_v2 = vpop.f32.mrf.mxu1 }
 0x3b6   : > { %1841 = vst [vmem:[%s407_s20 + $0x8] sm:$0xff] %v1839_v37 }
 0x3b7   : > { %2181 = shalt.err (!%p2178_p3)
}
 0x3b8   : > { %s2182_s0 = scalar_lea.hbm %s2673_s26, 256  ;;  %s2186_s19 = scalar_lea.hbm %s2720_s12, 512 }
 0x3b9   : > { %p2183_p4 = scmp.ne.s32.totalorder %s2673_s26, %s2182_s0  ;;  %p2187_p9 = scmp.lt.s32.totalorder %s2673_s26, %s2720_s12 }
 0x3ba   : > { %p2188_p10 = scmp.lt.s32.totalorder %s2186_s19, %s2182_s0 }
 0x3bb   : > { %p2184_p7 = pnand %p2183_p4, %p2345_p5 }
 0x3bc   : > { %p2189_p11 = por %p2188_p10, %p2187_p9 }
 0x3bd   : > { %p2185_p8 = pneg %p2184_p7 }
 0x3bf   : > { %p2190_p12 = pnand %p2189_p11, %p2185_p8 }
 0x3c1   : > { %2193 = shalt.err (!%p2190_p12)
}
 0x3c2   : > { %2013 = dma.vmem_to_hbm [thread:$0]  (%p2345_p5), %s1858_s17, 256, %s2673_s26, %s1843_s28  }
 0x3c3 PF: > { %p2019_p13 = scmp.ge.s32.totalorder %s2228_s24, 2  ;;  %s1869_s25 = sand.u32 1, %s2216_s21  }
 0x3c4   : > { %s1870_s16 = scalar_lea.sflag [#allocation5], %s1869_s25 }
 0x3c5   : > { %p2016_p0 = pnand %p2019_p13, %p2349_p6 }
 0x3c7   : > { %p2017_p1 = pneg %p2016_p0 }
 0x3c9   : > { %2211 = dma.done.wait (%p2017_p1), %s1870_s16, 256  }
 0x3ca   : > { %2213 = vsyncadd (%p2017_p1), %s1870_s16, 4294967040  ;;  %p22_p2 = scmp.ge.s32.totalorder %s2332_s27, 4   ;;  %s2743_s21 = smov %s2220_s22 }
 0x3cb   : > { %s2744_s22 = smov %s2224_s23  ;;  %s2745_s23 = smov %s2343_s30 }
 0x3cc   : > { %s2746_s24 = smov %s2332_s27  ;;  %24 = sbr.rel (!%p22_p2) target bundleno = 6 (0x6), region = 111 }
 0x3d1   :  { %1875 = vsyncpa [#allocation5], 1 }
 0x3d2   :  { %1877 = vsyncpa [#allocation5 + $0x1], 1 }

</bundles_post_ra>
